<compile_context>
chip_gen: v5e
topology: v5e:2x2
jax: 0.10.0
libtpu: 0.0.40
codegen_flags: <defaults>
</compile_context>

<pallas_src>
import functools

import jax
import jax.numpy as jnp
from jax.experimental import pallas as pl
from jax.experimental.pallas import tpu as pltpu

HIDDEN = 400       # logical hidden width of the PyTorch module
HP = 512           # hidden width padded to a multiple of 128 lanes
B_TILE_MAX = 512   # generation-neutral cap (v6e could go higher, v5e/v7x ~512)


def _round_up(x, m):
    return (x + m - 1) // m * m


def _cdiv(a, b):
    return -(-a // b)


def _dqn_kernel(x_ref,
                w1c_ref, b1c_ref,      # fused layer-1 of both streams (bf16 W, f32 b)
                w2_ref, b2_ref,        # advantage layer-2
                w3_ref, b3_ref,        # advantage layer-3
                vw2_ref, vb2_ref,      # value head (bf16 row vector + f32 scalar bias)
                out_ref,
                *, n_actions):
    # Fused first layer: [h1 | v1] in a single bf16 MXU pass, f32 accumulation.
    xb = x_ref[...].astype(jnp.bfloat16)                                    # (bt, IP)
    h = jnp.dot(xb, w1c_ref[...], preferred_element_type=jnp.float32) + b1c_ref[...]
    h = jnp.maximum(h, 0.0)                                                 # (bt, 2*HP) f32
    h1 = h[:, :HP]
    v1 = h[:, HP:]

    # Value head (400 -> 1): VPU multiply + XLU lane reduction (no N=1 MXU pass).
    # Done before the big matmuls so v1's live range ends early; the reduction
    # runs on the otherwise-idle XLU slot and overlaps the MXU work for free.
    val = jnp.sum(v1 * vw2_ref[...].astype(jnp.float32),
                  axis=-1, keepdims=True) + vb2_ref[...]                    # (bt, 1)

    # Advantage stream.
    h2 = jnp.dot(h1.astype(jnp.bfloat16), w2_ref[...],
                 preferred_element_type=jnp.float32) + b2_ref[...]
    h2 = jnp.maximum(h2, 0.0)
    adv = jnp.dot(h2.astype(jnp.bfloat16), w3_ref[...],
                  preferred_element_type=jnp.float32) + b3_ref[...]         # (bt, AP)

    # Dueling combine.  Padded adv columns are exactly zero (zero-padded w3/b3),
    # so a full-row sum divided by the *real* n_actions equals adv.mean(dim=1).
    adv_mean = jnp.sum(adv, axis=-1, keepdims=True) * (1.0 / n_actions)
    out_ref[...] = val + (adv - adv_mean)


def pack_params(params, n_input, n_actions):
    """One-time packing: zero-pad to lane-aligned shapes and cast the big
    matrices to bf16.  Call once; reuse the result for every forward step."""
    IP = _round_up(n_input, 128)
    AP = _round_up(n_actions, 128)

    def pad2(w, r, c, dtype=jnp.float32):
        w = jnp.asarray(w, jnp.float32)
        out = jnp.zeros((r, c), jnp.float32).at[:w.shape[0], :w.shape[1]].set(w)
        return out.astype(dtype)

    w1c = jnp.concatenate([pad2(params["w1"], IP, HP, jnp.bfloat16),
                           pad2(params["vw1"], IP, HP, jnp.bfloat16)], axis=1)  # (IP, 2*HP)
    b1c = jnp.concatenate([pad2(params["b1"], 1, HP),
                           pad2(params["vb1"], 1, HP)], axis=1)                 # (1, 2*HP) f32
    w2 = pad2(params["w2"], HP, HP, jnp.bfloat16)
    b2 = pad2(params["b2"], 1, HP)
    w3 = pad2(params["w3"], HP, AP, jnp.bfloat16)
    b3 = pad2(params["b3"], 1, AP)
    vw2 = pad2(jnp.asarray(params["vw2"]).T, 1, HP, jnp.bfloat16)               # (1, HP)
    vb2 = jnp.asarray(params["vb2"], jnp.float32).reshape(1, 1)                 # (1, 1)
    # TODO(synk): on v7x, fp8 storage for w1c/w2 (bf16 x fp8 MXU path) would halve
    # weight VMEM again if accuracy permits; not applicable to v5e/v6e.
    return dict(w1c=w1c, b1c=b1c, w2=w2, b2=b2, w3=w3, b3=b3, vw2=vw2, vb2=vb2,
                IP=int(IP), AP=int(AP),
                n_input=int(n_input), n_actions=int(n_actions))


def _pick_batch_tile(B):
    """Balance rows across grid steps instead of hard-capping at B_TILE_MAX."""
    steps = max(_cdiv(B, B_TILE_MAX), 1)
    # With a 1-step grid the second TensorCore (v7x) would idle; split in two
    # whenever there are enough rows for two sublane-aligned tiles.
    if steps == 1 and B >= 16:
        steps = 2
    bt = _round_up(_cdiv(B, steps), 8)
    # Prefer a lane-friendly multiple of 128 when it adds no extra padded rows.
    if bt > 128:
        bt128 = _round_up(bt, 128)
        if _round_up(B, bt128) <= _round_up(B, bt):
            bt = bt128
    return bt


def dqn_forward(x, packed):
    """x: (B, n_input) any float dtype; packed: output of pack_params().
    Returns (B, n_actions) float32."""
    x = x.astype(jnp.float32)                                   # matches x.float()
    B, n_input = x.shape
    IP, AP = packed["IP"], packed["AP"]
    n_actions = packed["n_actions"]
    assert n_input == packed["n_input"], "packed params built for a different n_input"

    bt = _pick_batch_tile(B)
    B_pad = _round_up(B, bt)

    # Feature dim padded to 128 lanes (zero-filled).  Dropping this padding and
    # feeding a K=n_input matmul is legal (full-dim block) but underfills MXU
    # depth, so it is left as-is pending a benchmark.
    x_pad = jnp.zeros((B_pad, IP), jnp.float32).at[:B, :n_input].set(x)

    def w_spec(shape):
        # Grid-invariant operands: single-buffered, resident across the grid.
        return pl.BlockSpec(shape, lambda i: (0, 0), pipeline_mode=pl.Buffered(1))

    out = pl.pallas_call(
        functools.partial(_dqn_kernel, n_actions=n_actions),
        out_shape=jax.ShapeDtypeStruct((B_pad, AP), jnp.float32),
        grid=(B_pad // bt,),
        in_specs=[
            pl.BlockSpec((bt, IP), lambda i: (i, 0)),    # x: batch-tiled, pipelined
            w_spec((IP, 2 * HP)), w_spec((1, 2 * HP)),   # fused layer-1 W/b
            w_spec((HP, HP)),     w_spec((1, HP)),       # layer-2 W/b
            w_spec((HP, AP)),     w_spec((1, AP)),       # layer-3 W/b
            w_spec((1, HP)),      w_spec((1, 1)),        # value-head row + bias
        ],
        out_specs=pl.BlockSpec((bt, AP), lambda i: (i, 0)),
        compiler_params=pltpu.CompilerParams(
            dimension_semantics=("parallel",),           # megacore sharding on v7x
            vmem_limit_bytes=32 * 1024 * 1024,           # headroom for bigger tiles
        ),
    )(x_pad, packed["w1c"], packed["b1c"], packed["w2"], packed["b2"],
      packed["w3"], packed["b3"], packed["vw2"], packed["vb2"])

    return out[:B, :n_actions]


def init_params(key, n_input, n_actions):
    """Deterministic synthetic init (PyTorch-Linear-style uniform bounds)."""
    ks = jax.random.split(key, 10)

    def linear(kw, kb, fan_in, fan_out):
        bound = 1.0 / jnp.sqrt(jnp.float32(fan_in))
        w = jax.random.uniform(kw, (fan_in, fan_out), jnp.float32, -bound, bound)
        b = jax.random.uniform(kb, (1, fan_out), jnp.float32, -bound, bound)
        return w, b

    w1, b1 = linear(ks[0], ks[1], n_input, HIDDEN)
    w2, b2 = linear(ks[2], ks[3], HIDDEN, HIDDEN)
    w3, b3 = linear(ks[4], ks[5], HIDDEN, n_actions)
    vw1, vb1 = linear(ks[6], ks[7], n_input, HIDDEN)
    vw2, vb2 = linear(ks[8], ks[9], HIDDEN, 1)
    return dict(w1=w1, b1=b1, w2=w2, b2=b2, w3=w3, b3=b3,
                vw1=vw1, vb1=vb1, vw2=vw2, vb2=vb2)


def dqn_reference(x, p):
    """Plain-JAX reference for sanity checking."""
    x = x.astype(jnp.float32)
    h = jnp.maximum(x @ p["w1"] + p["b1"], 0.0)
    h = jnp.maximum(h @ p["w2"] + p["b2"], 0.0)
    adv = h @ p["w3"] + p["b3"]
    v = jnp.maximum(x @ p["vw1"] + p["vb1"], 0.0)
    val = v @ p["vw2"] + p["vb2"]
    return val + (adv - adv.mean(axis=1, keepdims=True))


if __name__ == "__main__":
    key = jax.random.PRNGKey(0)
    k_x, k_p, k_x2 = jax.random.split(key, 3)

    batch, n_input, n_actions = 2, 32, 8
    x = jax.random.normal(k_x, (batch, n_input), jnp.float32)
    params = init_params(k_p, n_input, n_actions)

    # Pack (pad + bf16-cast) the weights ONCE; every forward reuses them.
    packed = pack_params(params, n_input, n_actions)

    out = jax.block_until_ready(dqn_forward(x, packed))
    ref = dqn_reference(x, params)
    assert out.shape == (batch, n_actions)
    assert jnp.allclose(out, ref, atol=2e-2, rtol=2e-2), "mismatch vs reference (small batch)"

    # Also exercise the multi-tile batch path (balanced 2 x 152 tiles for B=300).
    xb = jax.random.normal(k_x2, (300, n_input), jnp.float32)
    outb = jax.block_until_ready(dqn_forward(xb, packed))
    refb = dqn_reference(xb, params)
    assert outb.shape == (300, n_actions)
    assert jnp.allclose(outb, refb, atol=2e-2, rtol=2e-2), "mismatch vs reference (tiled batch)"

    print("KERNEL_OK")
</pallas_src>

<mosaic_0001>
module attributes {stable_mosaic.version = 11 : i64} {
  func.func @_dqn_kernel(%arg0: i32, %arg1: memref<8x128xf32, #tpu.memory_space<vmem>>, %arg2: memref<128x1024xbf16, #tpu.memory_space<vmem>>, %arg3: memref<1x1024xf32, #tpu.memory_space<vmem>>, %arg4: memref<512x512xbf16, #tpu.memory_space<vmem>>, %arg5: memref<1x512xf32, #tpu.memory_space<vmem>>, %arg6: memref<512x128xbf16, #tpu.memory_space<vmem>>, %arg7: memref<1x128xf32, #tpu.memory_space<vmem>>, %arg8: memref<1x512xbf16, #tpu.memory_space<vmem>>, %arg9: memref<1x1xf32, #tpu.memory_space<vmem>>, %arg10: memref<8x128xf32, #tpu.memory_space<vmem>>) attributes {dimension_semantics = [#tpu.dimension_semantics<parallel>], iteration_bounds = array<i64: 1>, scalar_prefetch = 0 : i64, scratch_operands = 0 : i64, tpu.core_type = #tpu.core_type<tc>, window_params = [{transform_indices = @transform_0, window_bounds = array<i64: 8, 128>}, {pipeline_mode = #tpu.pipeline_mode<synchronous>, transform_indices = @transform_1, window_bounds = array<i64: 128, 1024>}, {pipeline_mode = #tpu.pipeline_mode<synchronous>, transform_indices = @transform_2, window_bounds = array<i64: 1, 1024>}, {pipeline_mode = #tpu.pipeline_mode<synchronous>, transform_indices = @transform_3, window_bounds = array<i64: 512, 512>}, {pipeline_mode = #tpu.pipeline_mode<synchronous>, transform_indices = @transform_4, window_bounds = array<i64: 1, 512>}, {pipeline_mode = #tpu.pipeline_mode<synchronous>, transform_indices = @transform_5, window_bounds = array<i64: 512, 128>}, {pipeline_mode = #tpu.pipeline_mode<synchronous>, transform_indices = @transform_6, window_bounds = array<i64: 1, 128>}, {pipeline_mode = #tpu.pipeline_mode<synchronous>, transform_indices = @transform_7, window_bounds = array<i64: 1, 512>}, {pipeline_mode = #tpu.pipeline_mode<synchronous>, transform_indices = @transform_8, window_bounds = array<i64: 1, 1>}, {transform_indices = @transform_9, window_bounds = array<i64: 8, 128>}]} {
    %c0 = arith.constant 0 : index
    %c0_0 = arith.constant 0 : index
    %0 = vector.load %arg1[%c0, %c0_0] : memref<8x128xf32, #tpu.memory_space<vmem>>, vector<8x128xf32>
    %1 = arith.truncf %0 : vector<8x128xf32> to vector<8x128xbf16>
    %c0_1 = arith.constant 0 : index
    %c0_2 = arith.constant 0 : index
    %2 = vector.load %arg2[%c0_1, %c0_2] : memref<128x1024xbf16, #tpu.memory_space<vmem>>, vector<128x1024xbf16>
    %cst = arith.constant dense<0.000000e+00> : vector<8x1024xf32>
    %3 = tpu.matmul %1, %2, %cst {dimension_numbers = #tpu.dot_dimension_numbers<[1], [0], [0], [1], [0, 0, 1, 1], [], []>} : vector<8x128xbf16>, vector<128x1024xbf16>, vector<8x1024xf32> -> vector<8x1024xf32>
    %c0_3 = arith.constant 0 : index
    %c0_4 = arith.constant 0 : index
    %4 = vector.load %arg3[%c0_3, %c0_4] : memref<1x1024xf32, #tpu.memory_space<vmem>>, vector<1x1024xf32>
    %5 = vector.broadcast %4 : vector<1x1024xf32> to vector<8x1024xf32>
    %6 = arith.addf %3, %5 : vector<8x1024xf32>
    %cst_5 = arith.constant 0.000000e+00 : f32
    %7 = vector.broadcast %cst_5 : f32 to vector<8x1024xf32>
    %8 = arith.maximumf %6, %7 : vector<8x1024xf32>
    %9 = vector.extract_strided_slice %8 {offsets = [0, 0], sizes = [8, 512], strides = [1, 1]} : vector<8x1024xf32> to vector<8x512xf32>
    %10 = vector.extract_strided_slice %8 {offsets = [0, 512], sizes = [8, 512], strides = [1, 1]} : vector<8x1024xf32> to vector<8x512xf32>
    %c0_6 = arith.constant 0 : index
    %c0_7 = arith.constant 0 : index
    %11 = vector.load %arg8[%c0_6, %c0_7] : memref<1x512xbf16, #tpu.memory_space<vmem>>, vector<1x512xbf16>
    %12 = arith.extf %11 : vector<1x512xbf16> to vector<1x512xf32>
    %13 = vector.broadcast %12 : vector<1x512xf32> to vector<8x512xf32>
    %14 = arith.mulf %10, %13 : vector<8x512xf32>
    %cst_8 = arith.constant dense<0.000000e+00> : vector<8xf32>
    %15 = vector.multi_reduction <add>, %14, %cst_8 [1] : vector<8x512xf32> to vector<8xf32>
    %16 = vector.shape_cast %15 : vector<8xf32> to vector<8x1xf32>
    %c0_9 = arith.constant 0 : index
    %c0_10 = arith.constant 0 : index
    %17 = vector.load %arg9[%c0_9, %c0_10] : memref<1x1xf32, #tpu.memory_space<vmem>>, vector<1x1xf32>
    %18 = vector.broadcast %17 : vector<1x1xf32> to vector<8x1xf32>
    %19 = arith.addf %16, %18 : vector<8x1xf32>
    %20 = arith.truncf %9 : vector<8x512xf32> to vector<8x512xbf16>
    %c0_11 = arith.constant 0 : index
    %c0_12 = arith.constant 0 : index
    %21 = vector.load %arg4[%c0_11, %c0_12] : memref<512x512xbf16, #tpu.memory_space<vmem>>, vector<512x512xbf16>
    %cst_13 = arith.constant dense<0.000000e+00> : vector<8x512xf32>
    %22 = tpu.matmul %20, %21, %cst_13 {dimension_numbers = #tpu.dot_dimension_numbers<[1], [0], [0], [1], [0, 0, 1, 1], [], []>} : vector<8x512xbf16>, vector<512x512xbf16>, vector<8x512xf32> -> vector<8x512xf32>
    %c0_14 = arith.constant 0 : index
    %c0_15 = arith.constant 0 : index
    %23 = vector.load %arg5[%c0_14, %c0_15] : memref<1x512xf32, #tpu.memory_space<vmem>>, vector<1x512xf32>
    %24 = vector.broadcast %23 : vector<1x512xf32> to vector<8x512xf32>
    %25 = arith.addf %22, %24 : vector<8x512xf32>
    %cst_16 = arith.constant 0.000000e+00 : f32
    %26 = vector.broadcast %cst_16 : f32 to vector<8x512xf32>
    %27 = arith.maximumf %25, %26 : vector<8x512xf32>
    %28 = arith.truncf %27 : vector<8x512xf32> to vector<8x512xbf16>
    %c0_17 = arith.constant 0 : index
    %c0_18 = arith.constant 0 : index
    %29 = vector.load %arg6[%c0_17, %c0_18] : memref<512x128xbf16, #tpu.memory_space<vmem>>, vector<512x128xbf16>
    %cst_19 = arith.constant dense<0.000000e+00> : vector<8x128xf32>
    %30 = tpu.matmul %28, %29, %cst_19 {dimension_numbers = #tpu.dot_dimension_numbers<[1], [0], [0], [1], [0, 0, 1, 1], [], []>} : vector<8x512xbf16>, vector<512x128xbf16>, vector<8x128xf32> -> vector<8x128xf32>
    %c0_20 = arith.constant 0 : index
    %c0_21 = arith.constant 0 : index
    %31 = vector.load %arg7[%c0_20, %c0_21] : memref<1x128xf32, #tpu.memory_space<vmem>>, vector<1x128xf32>
    %32 = vector.broadcast %31 : vector<1x128xf32> to vector<8x128xf32>
    %33 = arith.addf %30, %32 : vector<8x128xf32>
    %cst_22 = arith.constant dense<0.000000e+00> : vector<8xf32>
    %34 = vector.multi_reduction <add>, %33, %cst_22 [1] : vector<8x128xf32> to vector<8xf32>
    %35 = vector.shape_cast %34 : vector<8xf32> to vector<8x1xf32>
    %cst_23 = arith.constant 1.250000e-01 : f32
    %36 = vector.broadcast %cst_23 : f32 to vector<8x1xf32>
    %37 = arith.mulf %35, %36 : vector<8x1xf32>
    %38 = vector.broadcast %37 : vector<8x1xf32> to vector<8x128xf32>
    %39 = arith.subf %33, %38 : vector<8x128xf32>
    %40 = vector.broadcast %19 : vector<8x1xf32> to vector<8x128xf32>
    %41 = arith.addf %40, %39 : vector<8x128xf32>
    %c0_24 = arith.constant 0 : index
    %c0_25 = arith.constant 0 : index
    %42 = vector.load %arg10[%c0_24, %c0_25] : memref<8x128xf32, #tpu.memory_space<vmem>>, vector<8x128xf32>
    tpu.vector_store %arg10[%c0_24, %c0_25], %41 {strides = array<i32>} : memref<8x128xf32, #tpu.memory_space<vmem>>, vector<8x128xf32>,
    return
  }
  func.func @transform_0(%arg0: i32) -> (i32, i32) {
    %c0_i32 = arith.constant 0 : i32
    %c0_i32_0 = arith.constant 0 : i32
    return %arg0, %c0_i32 : i32, i32
  }
  func.func @transform_1(%arg0: i32) -> (i32, i32) {
    %c0_i32 = arith.constant 0 : i32
    %c0_i32_0 = arith.constant 0 : i32
    %c0_i32_1 = arith.constant 0 : i32
    return %c0_i32, %c0_i32_0 : i32, i32
  }
  func.func @transform_2(%arg0: i32) -> (i32, i32) {
    %c0_i32 = arith.constant 0 : i32
    %c0_i32_0 = arith.constant 0 : i32
    %c0_i32_1 = arith.constant 0 : i32
    return %c0_i32, %c0_i32_0 : i32, i32
  }
  func.func @transform_3(%arg0: i32) -> (i32, i32) {
    %c0_i32 = arith.constant 0 : i32
    %c0_i32_0 = arith.constant 0 : i32
    %c0_i32_1 = arith.constant 0 : i32
    return %c0_i32, %c0_i32_0 : i32, i32
  }
  func.func @transform_4(%arg0: i32) -> (i32, i32) {
    %c0_i32 = arith.constant 0 : i32
    %c0_i32_0 = arith.constant 0 : i32
    %c0_i32_1 = arith.constant 0 : i32
    return %c0_i32, %c0_i32_0 : i32, i32
  }
  func.func @transform_5(%arg0: i32) -> (i32, i32) {
    %c0_i32 = arith.constant 0 : i32
    %c0_i32_0 = arith.constant 0 : i32
    %c0_i32_1 = arith.constant 0 : i32
    return %c0_i32, %c0_i32_0 : i32, i32
  }
  func.func @transform_6(%arg0: i32) -> (i32, i32) {
    %c0_i32 = arith.constant 0 : i32
    %c0_i32_0 = arith.constant 0 : i32
    %c0_i32_1 = arith.constant 0 : i32
    return %c0_i32, %c0_i32_0 : i32, i32
  }
  func.func @transform_7(%arg0: i32) -> (i32, i32) {
    %c0_i32 = arith.constant 0 : i32
    %c0_i32_0 = arith.constant 0 : i32
    %c0_i32_1 = arith.constant 0 : i32
    return %c0_i32, %c0_i32_0 : i32, i32
  }
  func.func @transform_8(%arg0: i32) -> (i32, i32) {
    %c0_i32 = arith.constant 0 : i32
    %c0_i32_0 = arith.constant 0 : i32
    %c0_i32_1 = arith.constant 0 : i32
    return %c0_i32, %c0_i32_0 : i32, i32
  }
  func.func @transform_9(%arg0: i32) -> (i32, i32) {
    %c0_i32 = arith.constant 0 : i32
    %c0_i32_0 = arith.constant 0 : i32
    return %arg0, %c0_i32 : i32, i32
  }
}

</mosaic_0001>

<bundles_post_ra>
// kernel: tpu_custom_call.1
= control target key start
LH: loop header
LB: loop body
LE: loop exit
PB: predicated region body
PF: predicated region fallthrough
CT: control target
= control target key end

     0   :  { %s3481_s0 = inlined_call_operand.hbm [shape: f32[8,128], index: 0, kind: input, shape index: {}]   ;;  %s3482_s1 = inlined_call_operand.hbm [shape: bf16[128,1024], index: 1, kind: input, shape index: {}]   ;;  %s3483_s2 = inlined_call_operand.hbm [shape: f32[1,1024], index: 2, kind: input, shape index: {}]   ;;  %s3484_s3 = inlined_call_operand.hbm [shape: bf16[512,512], index: 3, kind: input, shape index: {}]   ;;  %s3485_s4 = inlined_call_operand.vmem [shape: f32[1,512], index: 4, kind: input, shape index: {}]   ;;  %s3486_s5 = inlined_call_operand.hbm [shape: bf16[512,128], index: 5, kind: input, shape index: {}]   ;;  %s3487_s6 = inlined_call_operand.hbm [shape: f32[1,128], index: 6, kind: input, shape index: {}]   ;;  %s3488_s7 = inlined_call_operand.vmem [shape: bf16[1,512], index: 7, kind: input, shape index: {}]   ;;  %s3489_s8 = inlined_call_operand.<no memory space> [shape: f32[1,1], index: 8, kind: input, shape index: {}]   ;;  %s3490_s9 = inlined_call_operand.hbm [shape: f32[8,128], index: 9, kind: output, shape index: {}]  }
   0x1   :  { %v14_v0 = vstv %s3489_s8 }
   0x2   :  { %15 = vst [vmem:[#allocation2] sm:$0x1] %v14_v0 }
   0x3   :  { %16 = vsyncpa [#allocation4], 0 }
   0x4   :  { %17 = vsyncpa [#allocation7], 0 }
   0x5   :  { %18 = vsyncpa [#allocation10], 0 }
   0x6   :  { %19 = vsyncpa [#allocation13], 0  ;;  %s36_s13 = sshll.u32 %s3482_s1, 4  ;;  %s37_s13 = int_to_ptr.hbm [resolvable:$true] %s36_s13 }
   0x7   :  { %20 = vsyncpa [#allocation5], 0  ;;  %s3325_s14 = smov [#allocation6]   ;;  %s60_s18 = sshll.u32 %s3484_s3, 4  ;;  %s61_s18 = int_to_ptr.hbm [resolvable:$true] %s60_s18 }
   0x8   :  { %s38_s15 = sshll.u32 %s3325_s14, 4  ;;  %s3326_s19 = smov 512   ;;  %s39_s15 = int_to_ptr.vmem [resolvable:$true] %s38_s15 }
   0x9   :  { %s3327_s8 = smov 32   ;;  %s3328_s20 = smov [#allocation9]  }
   0xa   :  { %44 = dma.hbm_to_vmem [thread:$0]  %s37_s13, 8192, %s39_s15, [#allocation7], %s3326_s19, %s3326_s19, %s3327_s8  }
   0xb   :  { %s62_s21 = sshll.u32 %s3328_s20, 4  ;;  %s3329_s22 = smov 256   ;;  %s63_s21 = int_to_ptr.vmem [resolvable:$true] %s62_s21 }
   0xc   :  { %s3330_s23 = smov 16   ;;  %s26_s25 = sshll.u32 %s3481_s0, 4  ;;  %s27_s25 = int_to_ptr.hbm [resolvable:$true] %s26_s25 }
   0xd   :  { %68 = dma.hbm_to_vmem [thread:$0]  %s61_s18, 16384, %s63_s21, [#allocation10], %s3329_s22, %s3329_s22, %s3330_s23  }
   0xe   :  { %s3331_s26 = smov [#allocation3]   ;;  %s50_s29 = sshll.u32 %s3483_s2, 4  ;;  %s51_s29 = int_to_ptr.hbm [resolvable:$true] %s50_s29 }
   0xf   :  { %s28_s27 = sshll.u32 %s3331_s26, 4  ;;  %s3332_s30 = smov [#allocation8]   ;;  %s29_s27 = int_to_ptr.vmem [resolvable:$true] %s28_s27 }
  0x10   :  { %31 = dma.hbm_to_vmem [thread:$0]  %s27_s25, 128, %s29_s27, [#allocation4]  }
  0x11   :  { %s52_s10 = sshll.u32 %s3332_s30, 4  ;;  %s75_s13 = sshll.u32 %s3486_s5, 4  ;;  %s53_s10 = int_to_ptr.vmem [resolvable:$true] %s52_s10  ;;  %s76_s13 = int_to_ptr.hbm [resolvable:$true] %s75_s13 }
  0x12   :  { %55 = dma.hbm_to_vmem [thread:$0]  %s51_s29, 128, %s53_s10, [#allocation7]  }
  0x13   :  { %s3333_s0 = smov [#allocation11]   ;;  %s89_s17 = sshll.u32 %s3487_s6, 4  ;;  %s90_s17 = int_to_ptr.hbm [resolvable:$true] %s89_s17 }
  0x14   :  { %s77_s14 = sshll.u32 %s3333_s0, 4  ;;  %s3334_s18 = smov 64   ;;  %s78_s14 = int_to_ptr.vmem [resolvable:$true] %s77_s14 }
  0x15   :  { %s3335_s2 = smov 4   ;;  %s3336_s19 = smov [#allocation12]  }
  0x16   :  { %83 = dma.hbm_to_vmem [thread:$0]  %s76_s13, 4096, %s78_s14, [#allocation10], %s3334_s18, %s3334_s18, %s3335_s2  }
  0x17   :  { %s91_s8 = sshll.u32 %s3336_s19, 4  ;;  %s92_s8 = int_to_ptr.vmem [resolvable:$true] %s91_s8 }
  0x18   :  { %94 = dma.hbm_to_vmem [thread:$0]  %s90_s17, 16, %s92_s8, [#allocation13]  }
  0x19   :  { %3315 = dma.done.wait [#allocation4], 128  }
  0x1a   :  { %3316 = vsyncadd [#allocation4], 4294967168 }
  0x1b   :  { %3317 = dma.done.wait [#allocation7], 8320  }
  0x1c   :  { %3318 = vsyncadd [#allocation7], 4294958976 }
  0x1d   :  { %3319 = dma.done.wait [#allocation10], 20480  }
  0x1e   :  { %3320 = vsyncadd [#allocation10], 4294946816 }
  0x1f   :  { %3321 = dma.done.wait [#allocation13], 16  }
  0x20   :  { %3322 = vsyncadd [#allocation13], 4294967280  ;;  %v2235_v1 = vld [vmem:[#allocation6 + $0x1c0] sm:$0xf]  ;;  %v2961_v3 = vld [vmem:[#allocation6 + $0x1c4] sm:$0xf] }
  0x21   :  { %v2965_v2 = vld [vmem:[#allocation6 + $0x1dc] sm:$0xf0]  ;;  %v2237_v5 = vld [vmem:[#allocation6 + $0x1e0] sm:$0xf0]  ;;  %v2243_v6 = vld [vmem:[#allocation6 + $0x1c8] sm:$0xf] }
  0x22   :  { %v2236_v4 = vor.u32 %v2965_v2, %v2235_v1  ;;  %v2966_v7 = vld [vmem:[#allocation6 + $0x1e4] sm:$0xf0]  ;;  %v2240_v8 = vor.u32 %v2961_v3, %v2237_v5  ;;  %v2962_v10 = vld [vmem:[#allocation6 + $0x1cc] sm:$0xf]  ;;  %v2203_v12 = vld [vmem:[#allocation6 + $0x180] sm:$0xf] }
  0x23   :  { %v2244_v9 = vor.u32 %v2966_v7, %v2243_v6  ;;  %v2245_v11 = vld [vmem:[#allocation6 + $0x1e8] sm:$0xf0]  ;;  %v2957_v14 = vld [vmem:[#allocation6 + $0x19c] sm:$0xf0]  ;;  %v2953_v15 = vld [vmem:[#allocation6 + $0x184] sm:$0xf] }
  0x24   :  { %527 = vmatpush.bf16.msra.mxu0 %v2236_v4  ;;  %v2248_v13 = vor.u32 %v2962_v10, %v2245_v11  ;;  %v2205_v16 = vld [vmem:[#allocation6 + $0x1a0] sm:$0xf0]  ;;  %540 = vmatpush.bf16.msra.mxu1 %v2240_v8  ;;  %v2204_v17 = vor.u32 %v2957_v14, %v2203_v12  ;;  %v2211_v19 = vld [vmem:[#allocation6 + $0x188] sm:$0xf]  ;;  %v2954_v21 = vld [vmem:[#allocation6 + $0x18c] sm:$0xf] }
  0x25   :  { %553 = vmatpush.bf16.msra.mxu2 %v2244_v9  ;;  %v2208_v18 = vor.u32 %v2953_v15, %v2205_v16  ;;  %v2958_v20 = vld [vmem:[#allocation6 + $0x1a4] sm:$0xf0]  ;;  %v2213_v23 = vld [vmem:[#allocation6 + $0x1a8] sm:$0xf0]  ;;  %v2171_v24 = vld [vmem:[#allocation6 + $0x140] sm:$0xf] }
  0x26   :  { %566 = vmatpush.bf16.msra.mxu3 %v2248_v13  ;;  %v2212_v22 = vor.u32 %v2958_v20, %v2211_v19  ;;  %v2949_v25 = vld [vmem:[#allocation6 + $0x15c] sm:$0xf0]  ;;  %v2216_v26 = vor.u32 %v2954_v21, %v2213_v23  ;;  %v2945_v27 = vld [vmem:[#allocation6 + $0x144] sm:$0xf]  ;;  %v2179_v29 = vld [vmem:[#allocation6 + $0x148] sm:$0xf] }
  0x27   :  { %v2173_v28 = vld [vmem:[#allocation6 + $0x160] sm:$0xf0]  ;;  %v2172_v30 = vor.u32 %v2949_v25, %v2171_v24  ;;  %v2950_v31 = vld [vmem:[#allocation6 + $0x164] sm:$0xf0]  ;;  %v2946_v32 = vld [vmem:[#allocation6 + $0x14c] sm:$0xf] }
  0x28   :  { %528 = vmatpush.bf16.msra.mxu0 %v2204_v17  ;;  %v2181_v33 = vld [vmem:[#allocation6 + $0x168] sm:$0xf0]  ;;  %541 = vmatpush.bf16.msra.mxu1 %v2208_v18  ;;  %v2176_v34 = vor.u32 %v2945_v27, %v2173_v28  ;;  %v2180_v35 = vor.u32 %v2950_v31, %v2179_v29  ;;  %v2139_v36 = vld [vmem:[#allocation6 + $0x100] sm:$0xf]  ;;  %v2937_v38 = vld [vmem:[#allocation6 + $0x104] sm:$0xf] }
  0x29   :  { %554 = vmatpush.bf16.msra.mxu2 %v2212_v22  ;;  %v2941_v37 = vld [vmem:[#allocation6 + $0x11c] sm:$0xf0]  ;;  %v2184_v39 = vor.u32 %v2946_v32, %v2181_v33  ;;  %v2141_v40 = vld [vmem:[#allocation6 + $0x120] sm:$0xf0]  ;;  %v2147_v41 = vld [vmem:[#allocation6 + $0x108] sm:$0xf] }
  0x2a   :  { %567 = vmatpush.bf16.msra.mxu3 %v2216_v26  ;;  %v2942_v42 = vld [vmem:[#allocation6 + $0x124] sm:$0xf0]  ;;  %v2938_v43 = vld [vmem:[#allocation6 + $0x10c] sm:$0xf]  ;;  %v2140_v45 = vor.u32 %v2941_v37, %v2139_v36  ;;  %v2144_v46 = vor.u32 %v2937_v38, %v2141_v40  ;;  %v2107_v48 = vld [vmem:[#allocation6 + $0xc0] sm:$0xf] }
  0x2b   :  { %v2149_v44 = vld [vmem:[#allocation6 + $0x128] sm:$0xf0]  ;;  %v2148_v47 = vor.u32 %v2942_v42, %v2147_v41  ;;  %v2933_v49 = vld [vmem:[#allocation6 + $0xdc] sm:$0xf0]  ;;  %v2929_v50 = vld [vmem:[#allocation6 + $0xc4] sm:$0xf] }
  0x2c   :  { %529 = vmatpush.bf16.msra.mxu0 %v2172_v30  ;;  %542 = vmatpush.bf16.msra.mxu1 %v2176_v34  ;;  %v2152_v51 = vor.u32 %v2938_v43, %v2149_v44  ;;  %v2109_v52 = vld [vmem:[#allocation6 + $0xe0] sm:$0xf0]  ;;  %v2115_v53 = vld [vmem:[#allocation6 + $0xc8] sm:$0xf]  ;;  %v2930_v55 = vld [vmem:[#allocation6 + $0xcc] sm:$0xf]  ;;  %v2108_v57 = vor.u32 %v2933_v49, %v2107_v48 }
  0x2d   :  { %555 = vmatpush.bf16.msra.mxu2 %v2180_v35  ;;  %v2934_v54 = vld [vmem:[#allocation6 + $0xe4] sm:$0xf0]  ;;  %v2117_v56 = vld [vmem:[#allocation6 + $0xe8] sm:$0xf0]  ;;  %v2112_v58 = vor.u32 %v2929_v50, %v2109_v52  ;;  %v2075_v60 = vld [vmem:[#allocation6 + $0x80] sm:$0xf] }
  0x2e   :  { %568 = vmatpush.bf16.msra.mxu3 %v2184_v39  ;;  %v2116_v59 = vor.u32 %v2934_v54, %v2115_v53  ;;  %v2925_v61 = vld [vmem:[#allocation6 + $0x9c] sm:$0xf0]  ;;  %v2921_v62 = vld [vmem:[#allocation6 + $0x84] sm:$0xf]  ;;  %v2120_v63 = vor.u32 %v2930_v55, %v2117_v56  ;;  %v2083_v1 = vld [vmem:[#allocation6 + $0x88] sm:$0xf] }
  0x2f   :  { %v2077_v0 = vld [vmem:[#allocation6 + $0xa0] sm:$0xf0]  ;;  %v2926_v2 = vld [vmem:[#allocation6 + $0xa4] sm:$0xf0]  ;;  %v2922_v3 = vld [vmem:[#allocation6 + $0x8c] sm:$0xf]  ;;  %v2076_v5 = vor.u32 %v2925_v61, %v2075_v60 }
  0x30   :  { %530 = vmatpush.bf16.msra.mxu0 %v2140_v45  ;;  %543 = vmatpush.bf16.msra.mxu1 %v2144_v46  ;;  %v2085_v4 = vld [vmem:[#allocation6 + $0xa8] sm:$0xf0]  ;;  %v2080_v6 = vor.u32 %v2921_v62, %v2077_v0  ;;  %v2084_v7 = vor.u32 %v2926_v2, %v2083_v1  ;;  %v2043_v8 = vld [vmem:[#allocation6 + $0x40] sm:$0xf]  ;;  %v2913_v10 = vld [vmem:[#allocation6 + $0x44] sm:$0xf] }
  0x31   :  { %556 = vmatpush.bf16.msra.mxu2 %v2148_v47  ;;  %v2917_v9 = vld [vmem:[#allocation6 + $0x5c] sm:$0xf0]  ;;  %v2088_v11 = vor.u32 %v2922_v3, %v2085_v4  ;;  %v2045_v12 = vld [vmem:[#allocation6 + $0x60] sm:$0xf0]  ;;  %v2051_v13 = vld [vmem:[#allocation6 + $0x48] sm:$0xf] }
  0x32   :  { %569 = vmatpush.bf16.msra.mxu3 %v2152_v51  ;;  %v2918_v14 = vld [vmem:[#allocation6 + $0x64] sm:$0xf0]  ;;  %v2914_v15 = vld [vmem:[#allocation6 + $0x4c] sm:$0xf]  ;;  %v2044_v17 = vor.u32 %v2917_v9, %v2043_v8  ;;  %v2011_v18 = vld [vmem:[#allocation6] sm:$0xf]  ;;  %v2048_v19 = vor.u32 %v2913_v10, %v2045_v12 }
  0x33   :  { %v2053_v16 = vld [vmem:[#allocation6 + $0x68] sm:$0xf0]  ;;  %v2052_v20 = vor.u32 %v2918_v14, %v2051_v13  ;;  %v2909_v21 = vld [vmem:[#allocation6 + $0x1c] sm:$0xf0]  ;;  %v2905_v22 = vld [vmem:[#allocation6 + $0x4] sm:$0xf] }
  0x34   :  { %531 = vmatpush.bf16.msra.mxu0 %v2108_v57  ;;  %544 = vmatpush.bf16.msra.mxu1 %v2112_v58  ;;  %v2013_v23 = vld [vmem:[#allocation6 + $0x20] sm:$0xf0]  ;;  %v2056_v24 = vor.u32 %v2914_v15, %v2053_v16  ;;  %v2019_v25 = vld [vmem:[#allocation6 + $0x8] sm:$0xf]  ;;  %v2906_v27 = vld [vmem:[#allocation6 + $0xc] sm:$0xf]  ;;  %v2012_v31 = vor.u32 %v2909_v21, %v2011_v18 }
  0x35   :  { %557 = vmatpush.bf16.msra.mxu2 %v2116_v59  ;;  %v2910_v26 = vld [vmem:[#allocation6 + $0x24] sm:$0xf0]  ;;  %v2021_v28 = vld [vmem:[#allocation6 + $0x28] sm:$0xf0]  ;;  %v2251_v29 = vld [vmem:[#allocation6 + $0x1d0] sm:$0xf]  ;;  %v2016_v35 = vor.u32 %v2905_v22, %v2013_v23 }
  0x36   :  { %570 = vmatpush.bf16.msra.mxu3 %v2120_v63  ;;  %v2967_v30 = vld [vmem:[#allocation6 + $0x1ec] sm:$0xf0]  ;;  %v123_v32 = vld [vmem:[#allocation3] sm:$0xff]  ;;  %v2963_v33 = vld [vmem:[#allocation6 + $0x1d4] sm:$0xf]  ;;  %v2020_v36 = vor.u32 %v2910_v26, %v2019_v25  ;;  %v2024_v37 = vor.u32 %v2906_v27, %v2021_v28  ;;  %s1996_s1 = sshll.u32 %s3490_s9, 4  ;;  %s1997_s1 = int_to_ptr.hbm [resolvable:$true] %s1996_s1 }
  0x37   :  { %v2253_v34 = vld [vmem:[#allocation6 + $0x1f0] sm:$0xf0]  ;;  %v2252_v38 = vor.u32 %v2967_v30, %v2251_v29  ;;  %v2219_v39 = vld [vmem:[#allocation6 + $0x190] sm:$0xf]  ;;  %v2259_v40 = vld [vmem:[#allocation6 + $0x1d8] sm:$0xf]  ;;  %v3410_v42 = vpack.c.bf16 %v123_v32, %v123_v32 }
  0x38   :  { %532 = vmatpush.bf16.msra.mxu0 %v2076_v5  ;;  %545 = vmatpush.bf16.msra.mxu1 %v2080_v6  ;;  %v2968_v41 = vld [vmem:[#allocation6 + $0x1f4] sm:$0xf0]  ;;  %v2256_v43 = vor.u32 %v2963_v33, %v2253_v34  ;;  %v2959_v44 = vld [vmem:[#allocation6 + $0x1ac] sm:$0xf0]  ;;  %v2964_v45 = vld [vmem:[#allocation6 + $0x1dc] sm:$0xf] }
  0x39   :  { %558 = vmatpush.bf16.msra.mxu2 %v2084_v7  ;;  %v2261_v46 = vld [vmem:[#allocation6 + $0x1f8] sm:$0xf0]  ;;  %v2955_v47 = vld [vmem:[#allocation6 + $0x194] sm:$0xf]  ;;  %v2260_v49 = vor.u32 %v2968_v41, %v2259_v40  ;;  %v2220_v50 = vor.u32 %v2959_v44, %v2219_v39  ;;  %v2187_v52 = vld [vmem:[#allocation6 + $0x150] sm:$0xf] }
  0x3a   :  { %571 = vmatpush.bf16.msra.mxu3 %v2088_v11  ;;  %v2221_v48 = vld [vmem:[#allocation6 + $0x1b0] sm:$0xf0]  ;;  %v2264_v51 = vor.u32 %v2964_v45, %v2261_v46  ;;  %v2227_v53 = vld [vmem:[#allocation6 + $0x198] sm:$0xf]  ;;  %v2951_v56 = vld [vmem:[#allocation6 + $0x16c] sm:$0xf0] }
  0x3b   :  { %v2960_v54 = vld [vmem:[#allocation6 + $0x1b4] sm:$0xf0]  ;;  %v2224_v55 = vor.u32 %v2955_v47, %v2221_v48  ;;  %v2956_v57 = vld [vmem:[#allocation6 + $0x19c] sm:$0xf]  ;;  %v2947_v59 = vld [vmem:[#allocation6 + $0x154] sm:$0xf]  ;;  %v2188_v62 = vor.u32 %v2951_v56, %v2187_v52 }
  0x3c   :  { %533 = vmatpush.bf16.msra.mxu0 %v2044_v17  ;;  %546 = vmatpush.bf16.msra.mxu1 %v2048_v19  ;;  %v2229_v58 = vld [vmem:[#allocation6 + $0x1b8] sm:$0xf0]  ;;  %v2189_v60 = vld [vmem:[#allocation6 + $0x170] sm:$0xf0]  ;;  %v2228_v61 = vor.u32 %v2960_v54, %v2227_v53  ;;  %v2155_v0 = vld [vmem:[#allocation6 + $0x110] sm:$0xf] }
  0x3d   :  { %559 = vmatpush.bf16.msra.mxu2 %v2052_v20  ;;  %v2232_v63 = vor.u32 %v2956_v57, %v2229_v58  ;;  %v2195_v1 = vld [vmem:[#allocation6 + $0x158] sm:$0xf]  ;;  %v2192_v3 = vor.u32 %v2947_v59, %v2189_v60  ;;  %v2943_v4 = vld [vmem:[#allocation6 + $0x12c] sm:$0xf0]  ;;  %v2948_v5 = vld [vmem:[#allocation6 + $0x15c] sm:$0xf] }
  0x3e   :  { %572 = vmatpush.bf16.msra.mxu3 %v2056_v24  ;;  %v2952_v2 = vld [vmem:[#allocation6 + $0x174] sm:$0xf0]  ;;  %v2197_v6 = vld [vmem:[#allocation6 + $0x178] sm:$0xf0]  ;;  %v2939_v7 = vld [vmem:[#allocation6 + $0x114] sm:$0xf]  ;;  %v2156_v10 = vor.u32 %v2943_v4, %v2155_v0 }
  0x3f   :  { %v2157_v8 = vld [vmem:[#allocation6 + $0x130] sm:$0xf0]  ;;  %v2196_v9 = vor.u32 %v2952_v2, %v2195_v1  ;;  %v2200_v11 = vor.u32 %v2948_v5, %v2197_v6  ;;  %v2123_v12 = vld [vmem:[#allocation6 + $0xd0] sm:$0xf]  ;;  %v2163_v13 = vld [vmem:[#allocation6 + $0x118] sm:$0xf] }
  0x40   :  { %534 = vmatpush.bf16.msra.mxu0 %v2012_v31  ;;  %547 = vmatpush.bf16.msra.mxu1 %v2016_v35  ;;  %v2944_v14 = vld [vmem:[#allocation6 + $0x134] sm:$0xf0]  ;;  %v2160_v15 = vor.u32 %v2939_v7, %v2157_v8  ;;  %v2935_v16 = vld [vmem:[#allocation6 + $0xec] sm:$0xf0]  ;;  %v2940_v17 = vld [vmem:[#allocation6 + $0x11c] sm:$0xf] }
  0x41   :  { %560 = vmatpush.bf16.msra.mxu2 %v2020_v36  ;;  %v2165_v18 = vld [vmem:[#allocation6 + $0x138] sm:$0xf0]  ;;  %v2931_v19 = vld [vmem:[#allocation6 + $0xd4] sm:$0xf]  ;;  %v2164_v21 = vor.u32 %v2944_v14, %v2163_v13  ;;  %v2124_v22 = vor.u32 %v2935_v16, %v2123_v12  ;;  %v2091_v24 = vld [vmem:[#allocation6 + $0x90] sm:$0xf] }
  0x42   :  { %573 = vmatpush.bf16.msra.mxu3 %v2024_v37  ;;  %v2125_v20 = vld [vmem:[#allocation6 + $0xf0] sm:$0xf0]  ;;  %v2168_v23 = vor.u32 %v2940_v17, %v2165_v18  ;;  %v2131_v25 = vld [vmem:[#allocation6 + $0xd8] sm:$0xf]  ;;  %v2927_v28 = vld [vmem:[#allocation6 + $0xac] sm:$0xf0] }
  0x43   :  { %535 = vmatmul.bf16.vlgmr.msra.gmra.mxu0 %v3410_v42  ;;  %548 = vmatmul.bf16.vlgmr.msra.gmra.mxu1 %v3410_v42  ;;  %v2936_v26 = vld [vmem:[#allocation6 + $0xf4] sm:$0xf0]  ;;  %v2128_v27 = vor.u32 %v2931_v19, %v2125_v20  ;;  %v2932_v29 = vld [vmem:[#allocation6 + $0xdc] sm:$0xf]  ;;  %v2923_v31 = vld [vmem:[#allocation6 + $0x94] sm:$0xf]  ;;  %v2092_v34 = vor.u32 %v2927_v28, %v2091_v24 }
  0x44   :  { %579 = vmatpush.bf16.msrb.mxu0 %v2252_v38  ;;  %592 = vmatpush.bf16.msrb.mxu1 %v2256_v43  ;;  %v2133_v30 = vld [vmem:[#allocation6 + $0xf8] sm:$0xf0]  ;;  %v2093_v32 = vld [vmem:[#allocation6 + $0xb0] sm:$0xf0]  ;;  %v2132_v33 = vor.u32 %v2936_v26, %v2131_v25  ;;  %v2059_v36 = vld [vmem:[#allocation6 + $0x50] sm:$0xf] }
  0x45   :  { %561 = vmatmul.bf16.vlgmr.msra.gmra.mxu2 %v3410_v42  ;;  %574 = vmatmul.bf16.vlgmr.msra.gmra.mxu3 %v3410_v42  ;;  %v2136_v35 = vor.u32 %v2932_v29, %v2133_v30  ;;  %v2099_v37 = vld [vmem:[#allocation6 + $0x98] sm:$0xf]  ;;  %v2096_v39 = vor.u32 %v2923_v31, %v2093_v32  ;;  %v2919_v40 = vld [vmem:[#allocation6 + $0x6c] sm:$0xf0]  ;;  %v2924_v41 = vld [vmem:[#allocation6 + $0x9c] sm:$0xf] }
  0x46   :  { %605 = vmatpush.bf16.msrb.mxu2 %v2260_v49  ;;  %618 = vmatpush.bf16.msrb.mxu3 %v2264_v51  ;;  %v2928_v38 = vld [vmem:[#allocation6 + $0xb4] sm:$0xf0]  ;;  %v2101_v43 = vld [vmem:[#allocation6 + $0xb8] sm:$0xf0]  ;;  %v2915_v44 = vld [vmem:[#allocation6 + $0x54] sm:$0xf]  ;;  %v2060_v48 = vor.u32 %v2919_v40, %v2059_v36 }
  0x47   :  { %v2061_v45 = vld [vmem:[#allocation6 + $0x70] sm:$0xf0]  ;;  %v2100_v46 = vor.u32 %v2928_v38, %v2099_v37  ;;  %v2027_v47 = vld [vmem:[#allocation6 + $0x10] sm:$0xf]  ;;  %v2104_v49 = vor.u32 %v2924_v41, %v2101_v43  ;;  %v2067_v51 = vld [vmem:[#allocation6 + $0x58] sm:$0xf] }
  0x48   :  { %580 = vmatpush.bf16.msrb.mxu0 %v2220_v50  ;;  %593 = vmatpush.bf16.msrb.mxu1 %v2224_v55  ;;  %v2911_v50 = vld [vmem:[#allocation6 + $0x2c] sm:$0xf0]  ;;  %v2920_v52 = vld [vmem:[#allocation6 + $0x74] sm:$0xf0]  ;;  %v2064_v53 = vor.u32 %v2915_v44, %v2061_v45  ;;  %v2907_v54 = vld [vmem:[#allocation6 + $0x14] sm:$0xf] }
  0x49   :  { %v2916_v55 = vld [vmem:[#allocation6 + $0x5c] sm:$0xf]  ;;  %v2029_v57 = vld [vmem:[#allocation6 + $0x30] sm:$0xf0]  ;;  %v2379_v58 = vld [vmem:[#allocation9 + $0xe0] sm:$0xf] }
  0x4a   :  { %606 = vmatpush.bf16.msrb.mxu2 %v2228_v61  ;;  %619 = vmatpush.bf16.msrb.mxu3 %v2232_v63  ;;  %v2069_v56 = vld [vmem:[#allocation6 + $0x78] sm:$0xf0]  ;;  %v2999_v59 = vld [vmem:[#allocation9 + $0xec] sm:$0xf0]  ;;  %v2507_v60 = vld [vmem:[#allocation9 + $0x1e0] sm:$0xf]  ;;  %v2028_v63 = vor.u32 %v2911_v50, %v2027_v47  ;;  %v2032_v5 = vor.u32 %v2907_v54, %v2029_v57 }
  0x4b   :  { %v3031_v61 = vld [vmem:[#allocation9 + $0x1ec] sm:$0xf0]  ;;  %v2072_v0 = vor.u32 %v2916_v55, %v2069_v56  ;;  %v2363_v1 = vld [vmem:[#allocation9 + $0xc0] sm:$0xf]  ;;  %v2908_v4 = vld [vmem:[#allocation6 + $0x1c] sm:$0xf]  ;;  %v2380_v6 = vor.u32 %v2999_v59, %v2379_v58 }
  0x4c   :  { %581 = vmatpush.bf16.msrb.mxu0 %v2188_v62  ;;  %594 = vmatpush.bf16.msrb.mxu1 %v2192_v3  ;;  %v2068_v62 = vor.u32 %v2920_v52, %v2067_v51  ;;  %v2035_v2 = vld [vmem:[#allocation6 + $0x18] sm:$0xf]  ;;  %v2037_v7 = vld [vmem:[#allocation6 + $0x38] sm:$0xf0]  ;;  %v2635_v8 = vld [vmem:[#allocation9 + $0x2e0] sm:$0xf] }
  0x4d   :  { %v2912_v3 = vld [vmem:[#allocation6 + $0x34] sm:$0xf0]  ;;  %v2763_v12 = vld [vmem:[#allocation9 + $0x3e0] sm:$0xf]  ;;  %v2040_v17 = vor.u32 %v2908_v4, %v2037_v7 }
  0x4e   :  { %607 = vmatpush.bf16.msrb.mxu2 %v2196_v9  ;;  %620 = vmatpush.bf16.msrb.mxu3 %v2200_v11  ;;  %v3063_v9 = vld [vmem:[#allocation9 + $0x2ec] sm:$0xf0]  ;;  %v2491_v14 = vld [vmem:[#allocation9 + $0x1c0] sm:$0xf]  ;;  %v2036_v16 = vor.u32 %v2912_v3, %v2035_v2 }
  0x4f   :  { %v2995_v11 = vld [vmem:[#allocation9 + $0xcc] sm:$0xf0]  ;;  %v2636_v18 = vor.u32 %v3063_v9, %v2635_v8  ;;  %v2747_v26 = vld [vmem:[#allocation9 + $0x3c0] sm:$0xf] }
  0x50   :  { %582 = vmatpush.bf16.msrb.mxu0 %v2156_v10  ;;  %595 = vmatpush.bf16.msrb.mxu1 %v2160_v15  ;;  %v2508_v10 = vor.u32 %v3031_v61, %v2507_v60  ;;  %v3095_v13 = vld [vmem:[#allocation9 + $0x3ec] sm:$0xf0]  ;;  %v2364_v19 = vor.u32 %v2995_v11, %v2363_v1  ;;  %v2475_v28 = vld [vmem:[#allocation9 + $0x1a0] sm:$0xf] }
  0x51   :  { %v3027_v15 = vld [vmem:[#allocation9 + $0x1cc] sm:$0xf0]  ;;  %v2764_v20 = vor.u32 %v3095_v13, %v2763_v12  ;;  %v2731_v38 = vld [vmem:[#allocation9 + $0x3a0] sm:$0xf] }
  0x52   :  { %608 = vmatpush.bf16.msrb.mxu2 %v2164_v21  ;;  %621 = vmatpush.bf16.msrb.mxu3 %v2168_v23  ;;  %v2347_v21 = vld [vmem:[#allocation9 + $0xa0] sm:$0xf]  ;;  %v3059_v23 = vld [vmem:[#allocation9 + $0x2cc] sm:$0xf0]  ;;  %v2492_v24 = vor.u32 %v3027_v15, %v2491_v14 }
  0x53   :  { %v2991_v25 = vld [vmem:[#allocation9 + $0xac] sm:$0xf0]  ;;  %v2459_v40 = vld [vmem:[#allocation9 + $0x180] sm:$0xf] }
  0x54   :  { %583 = vmatpush.bf16.msrb.mxu0 %v2124_v22  ;;  %596 = vmatpush.bf16.msrb.mxu1 %v2128_v27  ;;  %v2619_v22 = vld [vmem:[#allocation9 + $0x2c0] sm:$0xf]  ;;  %v3091_v27 = vld [vmem:[#allocation9 + $0x3cc] sm:$0xf0]  ;;  %v2348_v31 = vor.u32 %v2991_v25, %v2347_v21 }
  0x55   :  { %v3023_v29 = vld [vmem:[#allocation9 + $0x1ac] sm:$0xf0]  ;;  %v2620_v30 = vor.u32 %v3059_v23, %v2619_v22  ;;  %v2748_v32 = vor.u32 %v3091_v27, %v2747_v26  ;;  %v2587_v47 = vld [vmem:[#allocation9 + $0x280] sm:$0xf]  ;;  %v2997_v26 = vld [vmem:[#allocation9 + $0xe4] sm:$0xf] }
  0x56   :  { %609 = vmatpush.bf16.msrb.mxu2 %v2132_v33  ;;  %622 = vmatpush.bf16.msrb.mxu3 %v2136_v35  ;;  %v2331_v33 = vld [vmem:[#allocation9 + $0x80] sm:$0xf]  ;;  %v3055_v35 = vld [vmem:[#allocation9 + $0x2ac] sm:$0xf0]  ;;  %v2476_v36 = vor.u32 %v3023_v29, %v2475_v28  ;;  %v2381_v27 = vld [vmem:[#allocation9 + $0xf0] sm:$0xf0] }
  0x57   :  { %v2987_v37 = vld [vmem:[#allocation9 + $0x8c] sm:$0xf0]  ;;  %v2715_v51 = vld [vmem:[#allocation9 + $0x380] sm:$0xf]  ;;  %v3029_v28 = vld [vmem:[#allocation9 + $0x1e4] sm:$0xf] }
  0x58   :  { %584 = vmatpush.bf16.msrb.mxu0 %v2092_v34  ;;  %597 = vmatpush.bf16.msrb.mxu1 %v2096_v39  ;;  %v2603_v34 = vld [vmem:[#allocation9 + $0x2a0] sm:$0xf]  ;;  %v3087_v39 = vld [vmem:[#allocation9 + $0x3ac] sm:$0xf0]  ;;  %v2332_v44 = vor.u32 %v2987_v37, %v2331_v33  ;;  %v2509_v29 = vld [vmem:[#allocation9 + $0x1f0] sm:$0xf0] }
  0x59   :  { %v3019_v41 = vld [vmem:[#allocation9 + $0x18c] sm:$0xf0]  ;;  %v2604_v43 = vor.u32 %v3055_v35, %v2603_v34  ;;  %v2732_v45 = vor.u32 %v3087_v39, %v2731_v38  ;;  %v2299_v56 = vld [vmem:[#allocation9 + $0x40] sm:$0xf]  ;;  %v2993_v33 = vld [vmem:[#allocation9 + $0xc4] sm:$0xf]  ;;  %v2384_v38 = vor.u32 %v2997_v26, %v2381_v27 }
  0x5a   :  { %610 = vmatpush.bf16.msrb.mxu2 %v2100_v46  ;;  %623 = vmatpush.bf16.msrb.mxu3 %v2104_v49  ;;  %v2315_v46 = vld [vmem:[#allocation9 + $0x60] sm:$0xf]  ;;  %v2460_v49 = vor.u32 %v3019_v41, %v2459_v40  ;;  %v2983_v50 = vld [vmem:[#allocation9 + $0x6c] sm:$0xf0]  ;;  %v3061_v40 = vld [vmem:[#allocation9 + $0x2e4] sm:$0xf] }
  0x5b   :  { %v3083_v52 = vld [vmem:[#allocation9 + $0x38c] sm:$0xf0]  ;;  %v2316_v57 = vor.u32 %v2983_v50, %v2315_v46  ;;  %v2411_v12 = vld [vmem:[#allocation9 + $0x120] sm:$0xf]  ;;  %v2637_v41 = vld [vmem:[#allocation9 + $0x2f0] sm:$0xf0] }
  0x5c   :  { %585 = vmatpush.bf16.msrb.mxu0 %v2060_v48  ;;  %598 = vmatpush.bf16.msrb.mxu1 %v2064_v53  ;;  %v3051_v48 = vld [vmem:[#allocation9 + $0x28c] sm:$0xf0]  ;;  %v2443_v53 = vld [vmem:[#allocation9 + $0x160] sm:$0xf]  ;;  %v2716_v58 = vor.u32 %v3083_v52, %v2715_v51  ;;  %v2765_v46 = vld [vmem:[#allocation9 + $0x3f0] sm:$0xf0]  ;;  %v2640_v51 = vor.u32 %v3061_v40, %v2637_v41 }
  0x5d   :  { %v3015_v54 = vld [vmem:[#allocation9 + $0x16c] sm:$0xf0]  ;;  %v2588_v55 = vor.u32 %v3051_v48, %v2587_v47  ;;  %v2267_v15 = vld [vmem:[#allocation9] sm:$0xf]  ;;  %v3025_v47 = vld [vmem:[#allocation9 + $0x1c4] sm:$0xf] }
  0x5e   :  { %611 = vmatpush.bf16.msrb.mxu2 %v2068_v62  ;;  %624 = vmatpush.bf16.msrb.mxu3 %v2072_v0  ;;  %v3047_v59 = vld [vmem:[#allocation9 + $0x26c] sm:$0xf0]  ;;  %v2444_v60 = vor.u32 %v3015_v54, %v2443_v53  ;;  %v2699_v62 = vld [vmem:[#allocation9 + $0x360] sm:$0xf]  ;;  %v2493_v48 = vld [vmem:[#allocation9 + $0x1d0] sm:$0xf0] }
  0x5f   :  { %v2979_v61 = vld [vmem:[#allocation9 + $0x4c] sm:$0xf0]  ;;  %v2427_v0 = vld [vmem:[#allocation9 + $0x140] sm:$0xf]  ;;  %v2989_v54 = vld [vmem:[#allocation9 + $0xa4] sm:$0xf] }
  0x60   :  { %586 = vmatpush.bf16.msrb.mxu0 %v2028_v63  ;;  %599 = vmatpush.bf16.msrb.mxu1 %v2032_v5  ;;  %v3079_v63 = vld [vmem:[#allocation9 + $0x36c] sm:$0xf0]  ;;  %v2300_v3 = vor.u32 %v2979_v61, %v2299_v56  ;;  %v2283_v5 = vld [vmem:[#allocation9 + $0x20] sm:$0xf]  ;;  %v2621_v56 = vld [vmem:[#allocation9 + $0x2d0] sm:$0xf0] }
  0x61   :  { %v3011_v1 = vld [vmem:[#allocation9 + $0x14c] sm:$0xf0]  ;;  %v2700_v4 = vor.u32 %v3079_v63, %v2699_v62  ;;  %v2395_v22 = vld [vmem:[#allocation9 + $0x100] sm:$0xf]  ;;  %v2477_v61 = vld [vmem:[#allocation9 + $0x1b0] sm:$0xf0] }
  0x62   :  { %612 = vmatpush.bf16.msrb.mxu2 %v2036_v16  ;;  %625 = vmatpush.bf16.msrb.mxu3 %v2040_v17  ;;  %v3043_v7 = vld [vmem:[#allocation9 + $0x24c] sm:$0xf0]  ;;  %v2428_v8 = vor.u32 %v3011_v1, %v2427_v0  ;;  %v2667_v23 = vld [vmem:[#allocation9 + $0x320] sm:$0xf]  ;;  %v2985_v1 = vld [vmem:[#allocation9 + $0x84] sm:$0xf] }
  0x63   :  { %587 = vmatmul.bf16.vlgmr.msrb.gmra.mxu0 %v3410_v42  ;;  %600 = vmatmul.bf16.vlgmr.msrb.gmra.mxu1 %v3410_v42  ;;  %v2975_v9 = vld [vmem:[#allocation9 + $0x2c] sm:$0xf0]  ;;  %v2523_v34 = vld [vmem:[#allocation9 + $0x200] sm:$0xf]  ;;  %v2977_v26 = vld [vmem:[#allocation9 + $0x44] sm:$0xf] }
  0x64   :  { %1450 = vmatpush.bf16.msra.mxu0 %v2380_v6  ;;  %1463 = vmatpush.bf16.msra.mxu1 %v2508_v10  ;;  %v2555_v6 = vld [vmem:[#allocation9 + $0x240] sm:$0xf]  ;;  %v3075_v11 = vld [vmem:[#allocation9 + $0x34c] sm:$0xf0]  ;;  %v2284_v16 = vor.u32 %v2975_v9, %v2283_v5  ;;  %v2333_v5 = vld [vmem:[#allocation9 + $0x90] sm:$0xf0] }
  0x65   :  { %613 = vmatmul.bf16.vlgmr.msrb.gmra.mxu2 %v3410_v42  ;;  %626 = vmatmul.bf16.vlgmr.msrb.gmra.mxu3 %v3410_v42  ;;  %v2571_v42 = vld [vmem:[#allocation9 + $0x260] sm:$0xf]  ;;  %v3007_v13 = vld [vmem:[#allocation9 + $0x12c] sm:$0xf0]  ;;  %v2556_v14 = vor.u32 %v3043_v7, %v2555_v6  ;;  %v3085_v6 = vld [vmem:[#allocation9 + $0x3a4] sm:$0xf] }
  0x66   :  { %1476 = vmatpush.bf16.msra.mxu2 %v2636_v18  ;;  %1489 = vmatpush.bf16.msra.mxu3 %v2764_v20  ;;  %v2572_v2 = vor.u32 %v3047_v59, %v2571_v42  ;;  %v2683_v10 = vld [vmem:[#allocation9 + $0x340] sm:$0xf]  ;;  %v2971_v18 = vld [vmem:[#allocation9 + $0xc] sm:$0xf0]  ;;  %v2412_v21 = vor.u32 %v3007_v13, %v2411_v12  ;;  %v2496_v42 = vor.u32 %v3025_v47, %v2493_v48  ;;  %v2749_v59 = vld [vmem:[#allocation9 + $0x3d0] sm:$0xf0] }
  0x67   :  { %v2684_v17 = vor.u32 %v3075_v11, %v2683_v10  ;;  %v3039_v20 = vld [vmem:[#allocation9 + $0x22c] sm:$0xf0]  ;;  %v2733_v7 = vld [vmem:[#allocation9 + $0x3b0] sm:$0xf0]  ;;  %v2336_v11 = vor.u32 %v2985_v1, %v2333_v5  ;;  %v2981_v13 = vld [vmem:[#allocation9 + $0x64] sm:$0xf] }
  0x68   :  { %1451 = vmatpush.bf16.msra.mxu0 %v2364_v19  ;;  %1464 = vmatpush.bf16.msra.mxu1 %v2492_v24  ;;  %v2539_v19 = vld [vmem:[#allocation9 + $0x220] sm:$0xf]  ;;  %v3071_v24 = vld [vmem:[#allocation9 + $0x32c] sm:$0xf0]  ;;  %v2461_v9 = vld [vmem:[#allocation9 + $0x190] sm:$0xf0]  ;;  %v2736_v12 = vor.u32 %v3085_v6, %v2733_v7 }
  0x69   :  { %v3003_v25 = vld [vmem:[#allocation9 + $0x10c] sm:$0xf0]  ;;  %v2301_v27 = vld [vmem:[#allocation9 + $0x50] sm:$0xf0]  ;;  %v3005_v41 = vld [vmem:[#allocation9 + $0x124] sm:$0xf] }
  0x6a   :  { %1477 = vmatpush.bf16.msra.mxu2 %v2620_v30  ;;  %1490 = vmatpush.bf16.msra.mxu3 %v2748_v32  ;;  %v2540_v30 = vor.u32 %v3039_v20, %v2539_v19  ;;  %v2668_v32 = vor.u32 %v3071_v24, %v2667_v23  ;;  %v3035_v35 = vld [vmem:[#allocation9 + $0x20c] sm:$0xf0]  ;;  %v2396_v37 = vor.u32 %v3003_v25, %v2395_v22  ;;  %v2717_v19 = vld [vmem:[#allocation9 + $0x390] sm:$0xf0]  ;;  %v3013_v20 = vld [vmem:[#allocation9 + $0x164] sm:$0xf] }
  0x6b   :  { %v3067_v39 = vld [vmem:[#allocation9 + $0x30c] sm:$0xf0]  ;;  %v3073_v47 = vld [vmem:[#allocation9 + $0x344] sm:$0xf] }
  0x6c   :  { %1452 = vmatpush.bf16.msra.mxu0 %v2348_v31  ;;  %1465 = vmatpush.bf16.msra.mxu1 %v2476_v36  ;;  %v2268_v31 = vor.u32 %v2971_v18, %v2267_v15  ;;  %v2651_v36 = vld [vmem:[#allocation9 + $0x300] sm:$0xf]  ;;  %v2589_v15 = vld [vmem:[#allocation9 + $0x290] sm:$0xf0]  ;;  %v3081_v18 = vld [vmem:[#allocation9 + $0x384] sm:$0xf] }
  0x6d   :  { %v2652_v50 = vor.u32 %v3067_v39, %v2651_v36  ;;  %v2720_v24 = vor.u32 %v3081_v18, %v2717_v19  ;;  %v2701_v36 = vld [vmem:[#allocation9 + $0x370] sm:$0xf0]  ;;  %v3065_v1 = vld [vmem:[#allocation9 + $0x304] sm:$0xf] }
  0x6e   :  { %1478 = vmatpush.bf16.msra.mxu2 %v2604_v43  ;;  %1491 = vmatpush.bf16.msra.mxu3 %v2732_v45  ;;  %v2512_v43 = vor.u32 %v3029_v28, %v2509_v29  ;;  %v3093_v45 = vld [vmem:[#allocation9 + $0x3e4] sm:$0xf]  ;;  %v2429_v29 = vld [vmem:[#allocation9 + $0x150] sm:$0xf0] }
  0x6f   :  { %v2768_v53 = vor.u32 %v3093_v45, %v2765_v46  ;;  %v3009_v28 = vld [vmem:[#allocation9 + $0x144] sm:$0xf]  ;;  %v2285_v39 = vld [vmem:[#allocation9 + $0x30] sm:$0xf0] }
  0x70   :  { %1453 = vmatpush.bf16.msra.mxu0 %v2332_v44  ;;  %1466 = vmatpush.bf16.msra.mxu1 %v2460_v49  ;;  %v2365_v44 = vld [vmem:[#allocation9 + $0xd0] sm:$0xf0]  ;;  %v2524_v49 = vor.u32 %v3035_v35, %v2523_v34  ;;  %v3077_v34 = vld [vmem:[#allocation9 + $0x364] sm:$0xf] }
  0x71   :  { %v2368_v52 = vor.u32 %v2993_v33, %v2365_v44  ;;  %v2573_v33 = vld [vmem:[#allocation9 + $0x270] sm:$0xf0]  ;;  %v3041_v45 = vld [vmem:[#allocation9 + $0x244] sm:$0xf] }
  0x72   :  { %1479 = vmatpush.bf16.msra.mxu2 %v2588_v55  ;;  %1492 = vmatpush.bf16.msra.mxu3 %v2716_v58  ;;  %v3057_v55 = vld [vmem:[#allocation9 + $0x2c4] sm:$0xf]  ;;  %v2557_v46 = vld [vmem:[#allocation9 + $0x250] sm:$0xf0] }
  0x73   :  { %v3089_v58 = vld [vmem:[#allocation9 + $0x3c4] sm:$0xf]  ;;  %v2624_v62 = vor.u32 %v3057_v55, %v2621_v56  ;;  %v2560_v48 = vor.u32 %v3041_v45, %v2557_v46  ;;  %v2397_v55 = vld [vmem:[#allocation9 + $0x110] sm:$0xf0] }
  0x74   :  { %1454 = vmatpush.bf16.msra.mxu0 %v2316_v57  ;;  %1467 = vmatpush.bf16.msra.mxu1 %v2444_v60  ;;  %v2349_v57 = vld [vmem:[#allocation9 + $0xb0] sm:$0xf0]  ;;  %v3021_v60 = vld [vmem:[#allocation9 + $0x1a4] sm:$0xf]  ;;  %v2752_v0 = vor.u32 %v3089_v58, %v2749_v59 }
  0x75   :  { %v2352_v63 = vor.u32 %v2989_v54, %v2349_v57  ;;  %v2541_v57 = vld [vmem:[#allocation9 + $0x230] sm:$0xf0]  ;;  %v3069_v59 = vld [vmem:[#allocation9 + $0x324] sm:$0xf] }
  0x76   :  { %1480 = vmatpush.bf16.msra.mxu2 %v2572_v2  ;;  %1493 = vmatpush.bf16.msra.mxu3 %v2700_v4  ;;  %v3053_v2 = vld [vmem:[#allocation9 + $0x2a4] sm:$0xf]  ;;  %v2480_v4 = vor.u32 %v3021_v60, %v2477_v61  ;;  %v2669_v60 = vld [vmem:[#allocation9 + $0x330] sm:$0xf0] }
  0x77   :  { %v2672_v61 = vor.u32 %v3069_v59, %v2669_v60 }
  0x78   :  { %1455 = vmatpush.bf16.msra.mxu0 %v2300_v3  ;;  %1468 = vmatpush.bf16.msra.mxu1 %v2428_v8  ;;  %v2605_v3 = vld [vmem:[#allocation9 + $0x2b0] sm:$0xf0]  ;;  %v3017_v8 = vld [vmem:[#allocation9 + $0x184] sm:$0xf] }
  0x79   :  { %v2608_v10 = vor.u32 %v3053_v2, %v2605_v3  ;;  %v2653_v2 = vld [vmem:[#allocation9 + $0x310] sm:$0xf0] }
  0x7a   :  { %1481 = vmatpush.bf16.msra.mxu2 %v2556_v14  ;;  %1494 = vmatpush.bf16.msra.mxu3 %v2684_v17  ;;  %v3049_v14 = vld [vmem:[#allocation9 + $0x284] sm:$0xf]  ;;  %v2317_v17 = vld [vmem:[#allocation9 + $0x70] sm:$0xf0]  ;;  %v2656_v3 = vor.u32 %v3065_v1, %v2653_v2  ;;  %v3056_v1 = vld [vmem:[#allocation9 + $0x2b4] sm:$0xf0] }
  0x7b   :  { %v2592_v22 = vor.u32 %v3049_v14, %v2589_v15  ;;  %v2320_v23 = vor.u32 %v2981_v13, %v2317_v17  ;;  %v2515_v13 = vld [vmem:[#allocation9 + $0x1e8] sm:$0xf]  ;;  %v3032_v14 = vld [vmem:[#allocation9 + $0x1f4] sm:$0xf0] }
  0x7c   :  { %1456 = vmatpush.bf16.msra.mxu0 %v2284_v16  ;;  %1469 = vmatpush.bf16.msra.mxu1 %v2412_v21  ;;  %v2464_v16 = vor.u32 %v3017_v8, %v2461_v9  ;;  %v2445_v21 = vld [vmem:[#allocation9 + $0x170] sm:$0xf0] }
  0x7d   :  { %v2448_v25 = vor.u32 %v3013_v20, %v2445_v21  ;;  %v2516_v21 = vor.u32 %v3032_v14, %v2515_v13  ;;  %v3052_v13 = vld [vmem:[#allocation9 + $0x294] sm:$0xf0] }
  0x7e   :  { %1482 = vmatpush.bf16.msra.mxu2 %v2540_v30  ;;  %1495 = vmatpush.bf16.msra.mxu3 %v2668_v32  ;;  %v2304_v30 = vor.u32 %v2977_v26, %v2301_v27  ;;  %v3045_v32 = vld [vmem:[#allocation9 + $0x264] sm:$0xf]  ;;  %v3028_v26 = vld [vmem:[#allocation9 + $0x1d4] sm:$0xf0] }
  0x7f   :  { %v2576_v35 = vor.u32 %v3045_v32, %v2573_v33  ;;  %v2643_v32 = vld [vmem:[#allocation9 + $0x2e8] sm:$0xf]  ;;  %v3064_v33 = vld [vmem:[#allocation9 + $0x2f4] sm:$0xf0] }
  0x80   :  { %1457 = vmatpush.bf16.msra.mxu0 %v2268_v31  ;;  %1470 = vmatpush.bf16.msra.mxu1 %v2396_v37  ;;  %v2432_v31 = vor.u32 %v3009_v28, %v2429_v29  ;;  %v2704_v37 = vor.u32 %v3077_v34, %v2701_v36  ;;  %v2771_v34 = vld [vmem:[#allocation9 + $0x3e8] sm:$0xf]  ;;  %v2644_v46 = vor.u32 %v3064_v33, %v2643_v32  ;;  %v2976_v33 = vld [vmem:[#allocation9 + $0x34] sm:$0xf0] }
  0x81   :  { %v2291_v32 = vld [vmem:[#allocation9 + $0x28] sm:$0xf] }
  0x82   :  { %1483 = vmatpush.bf16.msra.mxu2 %v2524_v49  ;;  %1496 = vmatpush.bf16.msra.mxu3 %v2652_v50  ;;  %v2685_v49 = vld [vmem:[#allocation9 + $0x350] sm:$0xf0] }
  0x83   :  { %v2688_v50 = vor.u32 %v3073_v47, %v2685_v49 }
  0x84   :  { %1502 = vmatpush.bf16.msrb.mxu0 %v2384_v38  ;;  %1515 = vmatpush.bf16.msrb.mxu1 %v2512_v43  ;;  %v2973_v38 = vld [vmem:[#allocation9 + $0x24] sm:$0xf]  ;;  %v2413_v43 = vld [vmem:[#allocation9 + $0x130] sm:$0xf0] }
  0x85   :  { %v2288_v40 = vor.u32 %v2973_v38, %v2285_v39  ;;  %v2416_v44 = vor.u32 %v3005_v41, %v2413_v43  ;;  %v3096_v38 = vld [vmem:[#allocation9 + $0x3f4] sm:$0xf0]  ;;  %v2355_v39 = vld [vmem:[#allocation9 + $0xa8] sm:$0xf] }
  0x86   :  { %1528 = vmatpush.bf16.msrb.mxu2 %v2640_v51  ;;  %1541 = vmatpush.bf16.msrb.mxu3 %v2768_v53  ;;  %v2969_v51 = vld [vmem:[#allocation9 + $0x4] sm:$0xf]  ;;  %v2483_v43 = vld [vmem:[#allocation9 + $0x1a8] sm:$0xf] }
  0x87   :  { %v3001_v53 = vld [vmem:[#allocation9 + $0x104] sm:$0xf] }
  0x88   :  { %1503 = vmatpush.bf16.msrb.mxu0 %v2368_v52  ;;  %1516 = vmatpush.bf16.msrb.mxu1 %v2496_v42  ;;  %v2269_v52 = vld [vmem:[#allocation9 + $0x10] sm:$0xf0]  ;;  %v2400_v56 = vor.u32 %v3001_v53, %v2397_v55  ;;  %v3037_v42 = vld [vmem:[#allocation9 + $0x224] sm:$0xf]  ;;  %v3092_v55 = vld [vmem:[#allocation9 + $0x3d4] sm:$0xf0] }
  0x89   :  { %v2272_v54 = vor.u32 %v2969_v51, %v2269_v52  ;;  %v2544_v58 = vor.u32 %v3037_v42, %v2541_v57  ;;  %v3060_v51 = vld [vmem:[#allocation9 + $0x2d4] sm:$0xf0]  ;;  %v2755_v52 = vld [vmem:[#allocation9 + $0x3c8] sm:$0xf] }
  0x8a   :  { %1529 = vmatpush.bf16.msrb.mxu2 %v2624_v62  ;;  %1542 = vmatpush.bf16.msrb.mxu3 %v2752_v0  ;;  %v3033_v62 = vld [vmem:[#allocation9 + $0x204] sm:$0xf]  ;;  %v2988_v42 = vld [vmem:[#allocation9 + $0x94] sm:$0xf0]  ;;  %v2467_v57 = vld [vmem:[#allocation9 + $0x188] sm:$0xf] }
  0x8c   :  { %1504 = vmatpush.bf16.msrb.mxu0 %v2352_v63  ;;  %1517 = vmatpush.bf16.msrb.mxu1 %v2480_v4  ;;  %v2525_v63 = vld [vmem:[#allocation9 + $0x210] sm:$0xf0]  ;;  %v3420_v4 = vld [vmem:[#allocation8] sm:$0xff] }
  0x8d   :  { %v2528_v0 = vor.u32 %v3033_v62, %v2525_v63  ;;  %v191_v5 = vperm.slane %v3420_v4, 0  ;;  %v192_v6 = vperm.slane %v3420_v4, 1  ;;  %v193_v17 = vperm.slane %v3420_v4, 2 }
  0x8e   :  { %1530 = vmatpush.bf16.msrb.mxu2 %v2608_v10  ;;  %1543 = vmatpush.bf16.msrb.mxu3 %v2736_v12  ;;  %v2387_v10 = vld [vmem:[#allocation9 + $0xe8] sm:$0xf]  ;;  %v194_v20 = vperm.slane %v3420_v4, 3  ;;  %v2756_v62 = vor.u32 %v3092_v55, %v2755_v52  ;;  %v2389_v52 = vld [vmem:[#allocation9 + $0xf8] sm:$0xf0] }
  0x8f   :  { %v2517_v55 = vld [vmem:[#allocation9 + $0x1f8] sm:$0xf0] }
  0x90   :  { %1505 = vmatpush.bf16.msrb.mxu0 %v2336_v11  ;;  %1518 = vmatpush.bf16.msrb.mxu1 %v2464_v16  ;;  %v3000_v11 = vld [vmem:[#allocation9 + $0xf4] sm:$0xf0] }
  0x91   :  { %v2388_v18 = vor.u32 %v3000_v11, %v2387_v10 }
  0x92   :  { %1531 = vmatpush.bf16.msrb.mxu2 %v2592_v22  ;;  %1544 = vmatpush.bf16.msrb.mxu3 %v2720_v24  ;;  %v2371_v22 = vld [vmem:[#allocation9 + $0xc8] sm:$0xf] }
  0x94   :  { %1506 = vmatpush.bf16.msrb.mxu0 %v2320_v23  ;;  %1519 = vmatpush.bf16.msrb.mxu1 %v2448_v25  ;;  %v2996_v23 = vld [vmem:[#allocation9 + $0xd4] sm:$0xf0]  ;;  %v2499_v25 = vld [vmem:[#allocation9 + $0x1c8] sm:$0xf] }
  0x96   :  { %1532 = vmatpush.bf16.msrb.mxu2 %v2576_v35  ;;  %1545 = vmatpush.bf16.msrb.mxu3 %v2704_v37  ;;  %v2500_v37 = vor.u32 %v3028_v26, %v2499_v25  ;;  %v2579_v26 = vld [vmem:[#allocation9 + $0x268] sm:$0xf] }
  0x98   :  { %1507 = vmatpush.bf16.msrb.mxu0 %v2304_v30  ;;  %1520 = vmatpush.bf16.msrb.mxu1 %v2432_v31  ;;  %v2372_v31 = vor.u32 %v2996_v23, %v2371_v22  ;;  %v3012_v22 = vld [vmem:[#allocation9 + $0x154] sm:$0xf0] }
  0x9a   :  { %1533 = vmatpush.bf16.msrb.mxu2 %v2560_v48  ;;  %1546 = vmatpush.bf16.msrb.mxu3 %v2688_v50  ;;  %v2772_v48 = vor.u32 %v3096_v38, %v2771_v34  ;;  %v2627_v50 = vld [vmem:[#allocation9 + $0x2c8] sm:$0xf] }
  0x9b   :  { %v2628_v60 = vor.u32 %v3060_v51, %v2627_v50  ;;  %v2419_v34 = vld [vmem:[#allocation9 + $0x128] sm:$0xf]  ;;  %v2998_v50 = vld [vmem:[#allocation9 + $0xec] sm:$0xf] }
  0x9c   :  { %1508 = vmatpush.bf16.msrb.mxu0 %v2288_v40  ;;  %1521 = vmatpush.bf16.msrb.mxu1 %v2416_v44  ;;  %v2992_v40 = vld [vmem:[#allocation9 + $0xb4] sm:$0xf0]  ;;  %v2563_v38 = vld [vmem:[#allocation9 + $0x248] sm:$0xf] }
  0x9d   :  { %v3024_v44 = vld [vmem:[#allocation9 + $0x1b4] sm:$0xf0]  ;;  %v2356_v49 = vor.u32 %v2992_v40, %v2355_v39  ;;  %v2691_v40 = vld [vmem:[#allocation9 + $0x348] sm:$0xf] }
  0x9e   :  { %1534 = vmatpush.bf16.msrb.mxu2 %v2544_v58  ;;  %1547 = vmatpush.bf16.msrb.mxu3 %v2672_v61  ;;  %v3020_v58 = vld [vmem:[#allocation9 + $0x194] sm:$0xf0] }
  0x9f   :  { %v2468_v2 = vor.u32 %v3020_v58, %v2467_v57  ;;  %v3044_v39 = vld [vmem:[#allocation9 + $0x254] sm:$0xf0] }
  0xa0   :  { %1509 = vmatpush.bf16.msrb.mxu0 %v2272_v54  ;;  %1522 = vmatpush.bf16.msrb.mxu1 %v2400_v56  ;;  %v2484_v54 = vor.u32 %v3024_v44, %v2483_v43  ;;  %v2339_v56 = vld [vmem:[#allocation9 + $0x88] sm:$0xf]  ;;  %v3076_v44 = vld [vmem:[#allocation9 + $0x354] sm:$0xf0]  ;;  %v2564_v51 = vor.u32 %v3044_v39, %v2563_v38  ;;  %v3446_v38 = vld [vmem:[#allocation9 + $0x2b8] sm:$0xf0] }
  0xa1   :  { %v2340_v63 = vor.u32 %v2988_v42, %v2339_v56  ;;  %v2692_v56 = vor.u32 %v3076_v44, %v2691_v40  ;;  %v2547_v42 = vld [vmem:[#allocation9 + $0x228] sm:$0xf]  ;;  %v3040_v57 = vld [vmem:[#allocation9 + $0x234] sm:$0xf0]  ;;  %v3448_v39 = vld [vmem:[#allocation9 + $0x3ac] sm:$0xf] }
  0xa2   :  { %1535 = vmatpush.bf16.msrb.mxu2 %v2528_v0  ;;  %1548 = vmatpush.bf16.msrb.mxu3 %v2656_v3  ;;  %v2611_v0 = vld [vmem:[#allocation9 + $0x2a8] sm:$0xf]  ;;  %v3450_v40 = vld [vmem:[#allocation9 + $0x3b8] sm:$0xf0] }
  0xa3   :  { %v2739_v3 = vld [vmem:[#allocation9 + $0x3a8] sm:$0xf]  ;;  %v2612_v10 = vor.u32 %v3056_v1, %v2611_v0  ;;  %v2373_v1 = vld [vmem:[#allocation9 + $0xd8] sm:$0xf0] }
  0xc0   :  { %v536_v7 = vpop.f32.mrf.mxu0  ;;  %v549_v9 = vpop.f32.mrf.mxu1 }
  0xc1   :  { %v537_v8 = vadd.f32 %v536_v7, %v191_v5  ;;  %v550_v12 = vadd.f32 %v549_v9, %v192_v6  ;;  %v3088_v5 = vld [vmem:[#allocation9 + $0x3b4] sm:$0xf0]  ;;  %v2323_v6 = vld [vmem:[#allocation9 + $0x68] sm:$0xf] }
  0xc2   :  { %v2984_v7 = vld [vmem:[#allocation9 + $0x74] sm:$0xf0]  ;;  %v2740_v11 = vor.u32 %v3088_v5, %v2739_v3  ;;  %v2501_v3 = vld [vmem:[#allocation9 + $0x1d8] sm:$0xf0]  ;;  %v2548_v5 = vor.u32 %v3040_v57, %v2547_v42  ;;  %v2982_v42 = vld [vmem:[#allocation9 + $0x6c] sm:$0xf] }
  0xc3   :  { %v631_v15 = vmax.f32 %v537_v8, 0.0  ;;  %v632_v16 = vmax.f32 %v550_v12, 0.0  ;;  %v2451_v8 = vld [vmem:[#allocation9 + $0x168] sm:$0xf]  ;;  %v3016_v9 = vld [vmem:[#allocation9 + $0x174] sm:$0xf0]  ;;  %v2324_v14 = vor.u32 %v2984_v7, %v2323_v6 }
  0xc4   :  { %v2595_v12 = vld [vmem:[#allocation9 + $0x288] sm:$0xf]  ;;  %v3036_v7 = vld [vmem:[#allocation9 + $0x214] sm:$0xf0] }
  0xc5   :  { %v3425_v19 = vpack.c.bf16 %v631_v15, %v631_v15  ;;  %v3428_v24 = vpack.c.bf16 %v632_v16, %v632_v16  ;;  %v2452_v15 = vor.u32 %v3016_v9, %v2451_v8  ;;  %v2723_v16 = vld [vmem:[#allocation9 + $0x388] sm:$0xf]  ;;  %v2596_v23 = vor.u32 %v3052_v13, %v2595_v12  ;;  %v2645_v12 = vld [vmem:[#allocation9 + $0x2f8] sm:$0xf0]  ;;  %v3094_v13 = vld [vmem:[#allocation9 + $0x3ec] sm:$0xf] }
  0xc6   :  { %v2531_v6 = vld [vmem:[#allocation9 + $0x208] sm:$0xf] }
  0xc7   :  { %1458 = vmatmul.bf16.vlgmr.msra.gmra.mxu0 %v3425_v19  ;;  %1471 = vmatmul.bf16.vlgmr.msra.gmra.mxu1 %v3428_v24  ;;  %v2659_v8 = vld [vmem:[#allocation9 + $0x308] sm:$0xf] }
  0xc8   :  { %v562_v27 = vpop.f32.mrf.mxu2  ;;  %v575_v29 = vpop.f32.mrf.mxu3  ;;  %1554 = vmatpush.bf16.msra.mxu0 %v2388_v18  ;;  %1567 = vmatpush.bf16.msra.mxu1 %v2516_v21  ;;  %v2307_v18 = vld [vmem:[#allocation9 + $0x48] sm:$0xf] }
  0xc9   :  { %v563_v28 = vadd.f32 %v562_v27, %v193_v17  ;;  %v538_v30 = vpop.f32.mrf.mxu0  ;;  %v576_v35 = vadd.f32 %v575_v29, %v194_v20  ;;  %v551_v36 = vpop.f32.mrf.mxu1  ;;  %v3084_v17 = vld [vmem:[#allocation9 + $0x394] sm:$0xf0]  ;;  %v2435_v21 = vld [vmem:[#allocation9 + $0x148] sm:$0xf] }
  0xca   :  { %v2980_v20 = vld [vmem:[#allocation9 + $0x54] sm:$0xf0]  ;;  %v2724_v25 = vor.u32 %v3084_v17, %v2723_v16  ;;  %v2436_v29 = vor.u32 %v3012_v22, %v2435_v21  ;;  %v2707_v30 = vld [vmem:[#allocation9 + $0x368] sm:$0xf]  ;;  %v2485_v21 = vld [vmem:[#allocation9 + $0x1b8] sm:$0xf0]  ;;  %v2532_v22 = vor.u32 %v3036_v7, %v2531_v6 }
  0xcb   :  { %v633_v41 = vmax.f32 %v563_v28, 0.0  ;;  %v634_v45 = vmax.f32 %v576_v35, 0.0  ;;  %v3048_v27 = vld [vmem:[#allocation9 + $0x274] sm:$0xf0]  ;;  %v2308_v28 = vor.u32 %v2980_v20, %v2307_v18  ;;  %v2357_v18 = vld [vmem:[#allocation9 + $0xb8] sm:$0xf0] }
  0xcc   :  { %1555 = vmatpush.bf16.msra.mxu0 %v2372_v31  ;;  %1568 = vmatpush.bf16.msra.mxu1 %v2500_v37  ;;  %v3080_v31 = vld [vmem:[#allocation9 + $0x374] sm:$0xf0]  ;;  %v2580_v36 = vor.u32 %v3048_v27, %v2579_v26  ;;  %v3022_v20 = vld [vmem:[#allocation9 + $0x1ac] sm:$0xf]  ;;  %v2597_v7 = vld [vmem:[#allocation9 + $0x298] sm:$0xf0] }
  0xcd   :  { %v3432_v47 = vpack.c.bf16 %v633_v41, %v633_v41  ;;  %v3434_v53 = vpack.c.bf16 %v634_v45, %v634_v45  ;;  %v3008_v35 = vld [vmem:[#allocation9 + $0x134] sm:$0xf0]  ;;  %v2708_v37 = vor.u32 %v3080_v31, %v2707_v30  ;;  %v2292_v41 = vor.u32 %v2976_v33, %v2291_v32  ;;  %v2275_v45 = vld [vmem:[#allocation9 + $0x8] sm:$0xf]  ;;  %v3090_v26 = vld [vmem:[#allocation9 + $0x3cc] sm:$0xf] }
  0xce   :  { %v2420_v43 = vor.u32 %v3008_v35, %v2419_v34  ;;  %v2986_v30 = vld [vmem:[#allocation9 + $0x8c] sm:$0xf]  ;;  %v2341_v31 = vld [vmem:[#allocation9 + $0x98] sm:$0xf0] }
  0xcf   :  { %1484 = vmatmul.bf16.vlgmr.msra.gmra.mxu2 %v3432_v47  ;;  %1497 = vmatmul.bf16.vlgmr.msra.gmra.mxu3 %v3434_v53  ;;  %v3018_v33 = vld [vmem:[#allocation9 + $0x18c] sm:$0xf]  ;;  %v2469_v34 = vld [vmem:[#allocation9 + $0x198] sm:$0xf0]  ;;  %v2344_v44 = vor.u32 %v2986_v30, %v2341_v31 }
  0xd0   :  { %1580 = vmatpush.bf16.msra.mxu2 %v2644_v46  ;;  %v564_v59 = vpop.f32.mrf.mxu2  ;;  %1593 = vmatpush.bf16.msra.mxu3 %v2772_v48  ;;  %v577_v61 = vpop.f32.mrf.mxu3  ;;  %v2972_v46 = vld [vmem:[#allocation9 + $0x14] sm:$0xf0]  ;;  %v2403_v48 = vld [vmem:[#allocation9 + $0x108] sm:$0xf]  ;;  %v3444_v35 = vld [vmem:[#allocation9 + $0x2ac] sm:$0xf] }
  0xd1   :  { %1556 = vmatpush.bf16.msra.mxu0 %v2356_v49  ;;  %1569 = vmatpush.bf16.msra.mxu1 %v2484_v54  ;;  %v3004_v49 = vld [vmem:[#allocation9 + $0x114] sm:$0xf0]  ;;  %v3030_v54 = vld [vmem:[#allocation9 + $0x1ec] sm:$0xf]  ;;  %v2276_v58 = vor.u32 %v2972_v46, %v2275_v45  ;;  %v195_v45 = vperm.slane %v3420_v4, 4 }
  0xd2   :  { %v2404_v59 = vor.u32 %v3004_v49, %v2403_v48  ;;  %v3072_v61 = vld [vmem:[#allocation9 + $0x334] sm:$0xf0]  ;;  %v2520_v0 = vor.u32 %v3030_v54, %v2517_v55  ;;  %v639_v48 = vld [vmem:[%s3488_s7] sm:$0xf]  ;;  %v196_v49 = vperm.slane %v3420_v4, 5  ;;  %v2472_v54 = vor.u32 %v3018_v33, %v2469_v34 }
  0xd3   :  { %v2616_v55 = vor.u32 %v3444_v35, %v3446_v38  ;;  %v640_v57 = vunpack.c.l.bf16 %v639_v48  ;;  %v3046_v34 = vld [vmem:[#allocation9 + $0x26c] sm:$0xf]  ;;  %v2581_v35 = vld [vmem:[#allocation9 + $0x278] sm:$0xf0] }
  0xd4   :  { %1581 = vmatpush.bf16.msra.mxu2 %v2628_v60  ;;  %1594 = vmatpush.bf16.msra.mxu3 %v2756_v62  ;;  %v2675_v60 = vld [vmem:[#allocation9 + $0x328] sm:$0xf]  ;;  %v2994_v62 = vld [vmem:[#allocation9 + $0xcc] sm:$0xf] }
  0xd5   :  { %1557 = vmatpush.bf16.msra.mxu0 %v2340_v63  ;;  %1570 = vmatpush.bf16.msra.mxu1 %v2468_v2  ;;  %v2392_v63 = vor.u32 %v2998_v50, %v2389_v52  ;;  %v3026_v2 = vld [vmem:[#allocation9 + $0x1cc] sm:$0xf]  ;;  %v2676_v9 = vor.u32 %v3072_v61, %v2675_v60  ;;  %v2376_v16 = vor.u32 %v2994_v62, %v2373_v1  ;;  %v198_v52 = vperm.slane %v3420_v4, 7  ;;  %v2325_v60 = vld [vmem:[#allocation9 + $0x78] sm:$0xf0] }
  0xd6   :  { %v2504_v17 = vor.u32 %v3026_v2, %v2501_v3  ;;  %v3014_v61 = vld [vmem:[#allocation9 + $0x16c] sm:$0xf]  ;;  %v2453_v62 = vld [vmem:[#allocation9 + $0x178] sm:$0xf0]  ;;  %v642_v2 = vperm.slane %v640_v57, 0  ;;  %v643_v3 = vperm.slane %v640_v57, 2 }
  0xd7   :  { %1510 = vmatmul.bf16.vlgmr.msrb.gmra.mxu0 %v3425_v19  ;;  %1523 = vmatmul.bf16.vlgmr.msrb.gmra.mxu1 %v3428_v24  ;;  %v3050_v1 = vld [vmem:[#allocation9 + $0x28c] sm:$0xf] }
  0xd8   :  { %1582 = vmatpush.bf16.msra.mxu2 %v2612_v10  ;;  %1595 = vmatpush.bf16.msra.mxu3 %v2740_v11  ;;  %v3068_v10 = vld [vmem:[#allocation9 + $0x314] sm:$0xf0]  ;;  %v3062_v11 = vld [vmem:[#allocation9 + $0x2ec] sm:$0xf]  ;;  %v2600_v30 = vor.u32 %v3050_v1, %v2597_v7  ;;  %v2677_v7 = vld [vmem:[#allocation9 + $0x338] sm:$0xf0] }
  0xd9   :  { %1558 = vmatpush.bf16.msra.mxu0 %v2324_v14  ;;  %1571 = vmatpush.bf16.msra.mxu1 %v2452_v15  ;;  %v2773_v14 = vld [vmem:[#allocation9 + $0x3f8] sm:$0xf0]  ;;  %v2990_v15 = vld [vmem:[#allocation9 + $0xac] sm:$0xf]  ;;  %v2660_v27 = vor.u32 %v3068_v10, %v2659_v8 }
  0xda   :  { %v2776_v32 = vor.u32 %v3094_v13, %v2773_v14  ;;  %v650_v13 = vperm.slane %v642_v2, 0  ;;  %v651_v14 = vperm.slane %v643_v3, 0  ;;  %v3006_v48 = vld [vmem:[#allocation9 + $0x12c] sm:$0xf]  ;;  %v2549_v2 = vld [vmem:[#allocation9 + $0x238] sm:$0xf0] }
  0xdb   :  { %v3038_v1 = vld [vmem:[#allocation9 + $0x22c] sm:$0xf] }
  0xdc   :  { %1583 = vmatpush.bf16.msra.mxu2 %v2596_v23  ;;  %1596 = vmatpush.bf16.msra.mxu3 %v2724_v25  ;;  %v3058_v23 = vld [vmem:[#allocation9 + $0x2cc] sm:$0xf]  ;;  %v2629_v25 = vld [vmem:[#allocation9 + $0x2d8] sm:$0xf0] }
  0xdd   :  { %1559 = vmatpush.bf16.msra.mxu0 %v2308_v28  ;;  %1572 = vmatpush.bf16.msra.mxu1 %v2436_v29  ;;  %v2648_v28 = vor.u32 %v3062_v11, %v2645_v12  ;;  %v2757_v29 = vld [vmem:[#allocation9 + $0x3d8] sm:$0xf0]  ;;  %v645_v11 = vperm.slane %v640_v57, 6  ;;  %v3082_v12 = vld [vmem:[#allocation9 + $0x38c] sm:$0xf] }
  0xdf   :  { %1536 = vmatmul.bf16.vlgmr.msrb.gmra.mxu2 %v3432_v47  ;;  %1549 = vmatmul.bf16.vlgmr.msrb.gmra.mxu3 %v3434_v53 }
  0xe0   :  { %1584 = vmatpush.bf16.msra.mxu2 %v2580_v36  ;;  %1597 = vmatpush.bf16.msra.mxu3 %v2708_v37  ;;  %v2360_v36 = vor.u32 %v2990_v15, %v2357_v18  ;;  %v2488_v37 = vor.u32 %v3022_v20, %v2485_v21  ;;  %v588_v46 = vpop.f32.mrf.mxu0  ;;  %v601_v50 = vpop.f32.mrf.mxu1  ;;  %v2456_v18 = vor.u32 %v3014_v61, %v2453_v62  ;;  %v2725_v20 = vld [vmem:[#allocation9 + $0x398] sm:$0xf0]  ;;  %v2978_v21 = vld [vmem:[#allocation9 + $0x4c] sm:$0xf] }
  0xe1   :  { %1560 = vmatpush.bf16.msra.mxu0 %v2292_v41  ;;  %1573 = vmatpush.bf16.msra.mxu1 %v2420_v43  ;;  %v2632_v41 = vor.u32 %v3058_v23, %v2629_v25  ;;  %v2760_v43 = vor.u32 %v3090_v26, %v2757_v29  ;;  %v2309_v23 = vld [vmem:[#allocation9 + $0x58] sm:$0xf0]  ;;  %v3010_v25 = vld [vmem:[#allocation9 + $0x14c] sm:$0xf]  ;;  %v2728_v33 = vor.u32 %v3082_v12, %v2725_v20  ;;  %v3101_v20 = vld [vmem:[#allocation11 + $0x20] sm:$0xff] }
  0xe2   :  { %v2437_v26 = vld [vmem:[#allocation9 + $0x158] sm:$0xf0]  ;;  %v3002_v62 = vld [vmem:[#allocation9 + $0x10c] sm:$0xf] }
  0xe3   :  { %v2277_v61 = vld [vmem:[#allocation9 + $0x18] sm:$0xf0] }
  0xe4   :  { %1585 = vmatpush.bf16.msra.mxu2 %v2564_v51  ;;  %1598 = vmatpush.bf16.msra.mxu3 %v2692_v56  ;;  %v197_v51 = vperm.slane %v3420_v4, 6  ;;  %v2744_v56 = vor.u32 %v3448_v39, %v3450_v40  ;;  %v2312_v40 = vor.u32 %v2978_v21, %v2309_v23  ;;  %v2533_v12 = vld [vmem:[#allocation9 + $0x218] sm:$0xf0]  ;;  %v3099_v23 = vld [vmem:[#allocation11 + $0x10] sm:$0xff] }
  0xe5   :  { %1561 = vmatpush.bf16.msra.mxu0 %v2276_v58  ;;  %1574 = vmatpush.bf16.msra.mxu1 %v2404_v59  ;;  %v3112_v21 = vld [vmem:[#allocation11 + $0x78] sm:$0xff] }
  0xe8   :  { %1586 = vmatpush.bf16.msra.mxu2 %v2548_v5  ;;  %1599 = vmatpush.bf16.msra.mxu3 %v2676_v9  ;;  %v614_v58 = vpop.f32.mrf.mxu2  ;;  %v627_v59 = vpop.f32.mrf.mxu3  ;;  %v644_v5 = vperm.slane %v640_v57, 4 }
  0xe9   :  { %1606 = vmatpush.bf16.msrb.mxu0 %v2392_v63  ;;  %1619 = vmatpush.bf16.msrb.mxu1 %v2520_v0  ;;  %v589_v63 = vadd.f32 %v588_v46, %v195_v45  ;;  %v602_v0 = vadd.f32 %v601_v50, %v196_v49  ;;  %v615_v4 = vadd.f32 %v614_v58, %v197_v51  ;;  %v590_v31 = vpop.f32.mrf.mxu0  ;;  %v2974_v45 = vld [vmem:[#allocation9 + $0x2c] sm:$0xf]  ;;  %v2293_v46 = vld [vmem:[#allocation9 + $0x38] sm:$0xf0] }
  0xea   :  { %1562 = vmatmul.bf16.vlgmr.msra.gmra.mxu0 %v3425_v19  ;;  %1575 = vmatmul.bf16.vlgmr.msra.gmra.mxu1 %v3428_v24  ;;  %v628_v6 = vadd.f32 %v627_v59, %v198_v52  ;;  %v652_v15 = vperm.slane %v644_v5, 0  ;;  %v2421_v49 = vld [vmem:[#allocation9 + $0x138] sm:$0xf0]  ;;  %v2584_v51 = vor.u32 %v3046_v34, %v2581_v35  ;;  %v3074_v58 = vld [vmem:[#allocation9 + $0x34c] sm:$0xf] }
  0xeb   :  { %v635_v8 = vmax.f32 %v589_v63, 0.0  ;;  %v636_v9 = vmax.f32 %v602_v0, 0.0  ;;  %v637_v10 = vmax.f32 %v615_v4, 0.0  ;;  %v2424_v57 = vor.u32 %v3006_v48, %v2421_v49  ;;  %v2693_v59 = vld [vmem:[#allocation9 + $0x358] sm:$0xf0]  ;;  %v3106_v31 = vld [vmem:[#allocation11 + $0x48] sm:$0xff] }
  0xec   :  { %1587 = vmatpush.bf16.msra.mxu2 %v2532_v22  ;;  %1600 = vmatpush.bf16.msra.mxu3 %v2660_v27  ;;  %v653_v22 = vperm.slane %v645_v11, 0  ;;  %v2405_v63 = vld [vmem:[#allocation9 + $0x118] sm:$0xf0]  ;;  %v2696_v4 = vor.u32 %v3074_v58, %v2693_v59  ;;  %v3034_v11 = vld [vmem:[#allocation9 + $0x20c] sm:$0xf] }
  0xed   :  { %1607 = vmatpush.bf16.msrb.mxu0 %v2376_v16  ;;  %1620 = vmatpush.bf16.msrb.mxu1 %v2504_v17  ;;  %v638_v16 = vmax.f32 %v628_v6, 0.0  ;;  %v2328_v17 = vor.u32 %v2982_v42, %v2325_v60  ;;  %v654_v27 = vmul.f32 %v650_v13, %v635_v8  ;;  %v656_v29 = vmul.f32 %v652_v15, %v637_v10  ;;  %v2970_v60 = vld [vmem:[#allocation9 + $0xc] sm:$0xf]  ;;  %v3104_v8 = vld [vmem:[#allocation11 + $0x38] sm:$0xff]  ;;  %v3103_v15 = vld [vmem:[#allocation11 + $0x30] sm:$0xff] }
  0xee   :  { %v2296_v42 = vor.u32 %v2974_v45, %v2293_v46  ;;  %v2280_v3 = vor.u32 %v2970_v60, %v2277_v61  ;;  %v2408_v5 = vor.u32 %v3002_v62, %v2405_v63  ;;  %v3070_v6 = vld [vmem:[#allocation9 + $0x32c] sm:$0xf]  ;;  %v3127_v60 = vld [vmem:[#allocation11 + $0xf0] sm:$0xff] }
  0xef   :  { %1588 = vmatmul.bf16.vlgmr.msra.gmra.mxu2 %v3432_v47  ;;  %1601 = vmatmul.bf16.vlgmr.msra.gmra.mxu3 %v3434_v53  ;;  %v657_v38 = vmul.f32 %v653_v22, %v638_v16  ;;  %v2680_v10 = vor.u32 %v3070_v6, %v2677_v7  ;;  %v3066_v13 = vld [vmem:[#allocation9 + $0x30c] sm:$0xf]  ;;  %v2536_v16 = vor.u32 %v3034_v11, %v2533_v12  ;;  %v3100_v22 = vld [vmem:[#allocation11 + $0x18] sm:$0xff] }
  0xf0   :  { %1632 = vmatpush.bf16.msrb.mxu2 %v2648_v28  ;;  %1645 = vmatpush.bf16.msrb.mxu3 %v2776_v32  ;;  %v655_v28 = vmul.f32 %v651_v14, %v636_v9  ;;  %v603_v32 = vpop.f32.mrf.mxu1  ;;  %v2552_v9 = vor.u32 %v3038_v1, %v2549_v2  ;;  %v2661_v14 = vld [vmem:[#allocation9 + $0x318] sm:$0xf0]  ;;  %v3114_v49 = vld [vmem:[#allocation11 + $0x88] sm:$0xff] }
  0xf1   :  { %1608 = vmatpush.bf16.msrb.mxu0 %v2360_v36  ;;  %1621 = vmatpush.bf16.msrb.mxu1 %v2488_v37  ;;  %v616_v36 = vpop.f32.mrf.mxu2  ;;  %v629_v37 = vpop.f32.mrf.mxu3  ;;  %v3118_v32 = vld [vmem:[#allocation11 + $0xa8] sm:$0xff] }
  0xf2   :  { %v658_v39 = vadd.f32 %v655_v28, %v654_v27  ;;  %v3109_v27 = vld [vmem:[#allocation11 + $0x60] sm:$0xff]  ;;  %v3107_v28 = vld [vmem:[#allocation11 + $0x50] sm:$0xff] }
  0xf3   :  { %v3105_v36 = vld [vmem:[#allocation11 + $0x40] sm:$0xff] }
  0xf4   :  { %1633 = vmatpush.bf16.msrb.mxu2 %v2632_v41  ;;  %1646 = vmatpush.bf16.msrb.mxu3 %v2760_v43  ;;  %v2440_v41 = vor.u32 %v3010_v25, %v2437_v26  ;;  %v3078_v43 = vld [vmem:[#allocation9 + $0x36c] sm:$0xf]  ;;  %v659_v50 = vadd.f32 %v658_v39, %v656_v29  ;;  %v3097_v26 = vld [vmem:[#allocation11] sm:$0xff]  ;;  %v3119_v29 = vld [vmem:[#allocation11 + $0xb0] sm:$0xff] }
  0xf5   :  { %1609 = vmatpush.bf16.msrb.mxu0 %v2344_v44  ;;  %1622 = vmatpush.bf16.msrb.mxu1 %v2472_v54  ;;  %v2709_v44 = vld [vmem:[#allocation9 + $0x378] sm:$0xf0]  ;;  %v3042_v54 = vld [vmem:[#allocation9 + $0x24c] sm:$0xf]  ;;  %v3117_v37 = vld [vmem:[#allocation11 + $0xa0] sm:$0xff] }
  0xf6   :  { %v2712_v52 = vor.u32 %v3078_v43, %v2709_v44  ;;  %v3110_v25 = vld [vmem:[#allocation11 + $0x68] sm:$0xff]  ;;  %v3116_v39 = vld [vmem:[#allocation11 + $0x98] sm:$0xff]  ;;  %v3115_v44 = vld [vmem:[#allocation11 + $0x90] sm:$0xff] }
  0xf8   :  { %1634 = vmatpush.bf16.msrb.mxu2 %v2616_v55  ;;  %1647 = vmatpush.bf16.msrb.mxu3 %v2744_v56  ;;  %v2565_v55 = vld [vmem:[#allocation9 + $0x258] sm:$0xf0]  ;;  %v660_v56 = vadd.f32 %v659_v50, %v657_v38 }
  0xf9   :  { %1610 = vmatpush.bf16.msrb.mxu0 %v2328_v17  ;;  %1623 = vmatpush.bf16.msrb.mxu1 %v2456_v18  ;;  %v2568_v0 = vor.u32 %v3042_v54, %v2565_v55  ;;  %v2664_v17 = vor.u32 %v3066_v13, %v2661_v14  ;;  %v3102_v18 = vld [vmem:[#allocation11 + $0x28] sm:$0xff]  ;;  %v3113_v55 = vld [vmem:[#allocation11 + $0x80] sm:$0xff] }
  0xfa   :  { %661 = vadd.xlane.f32.xlu0 %v660_v56  ;;  %v3128_v56 = vld [vmem:[#allocation11 + $0xf8] sm:$0xff] }
  0xfc   :  { %1635 = vmatpush.bf16.msrb.mxu2 %v2600_v30  ;;  %1648 = vmatpush.bf16.msrb.mxu3 %v2728_v33  ;;  %v3472_v30 = vld [vmem:[%s3485_s4] sm:$0xf]  ;;  %s3338_s4 = smov [#allocation14]  }
  0xfd   :  { %1611 = vmatpush.bf16.msrb.mxu0 %v2312_v40  ;;  %1624 = vmatpush.bf16.msrb.mxu1 %v2440_v41  ;;  %v802_v35 = vperm.slane %v3472_v30, 0  ;;  %v804_v12 = vperm.slane %v3472_v30, 2  ;;  %s1994_s21 = sshll.u32 %s3338_s4, 4  ;;  %s1995_s21 = int_to_ptr.vmem [resolvable:$true] %s1994_s21 }
 0x100   :  { %1636 = vmatpush.bf16.msrb.mxu2 %v2584_v51  ;;  %1649 = vmatpush.bf16.msrb.mxu3 %v2712_v52 }
 0x101   :  { %1612 = vmatpush.bf16.msrb.mxu0 %v2296_v42  ;;  %1625 = vmatpush.bf16.msrb.mxu1 %v2424_v57  ;;  %v803_v57 = vperm.slane %v3472_v30, 1 }
 0x104   :  { %1637 = vmatpush.bf16.msrb.mxu2 %v2568_v0  ;;  %1650 = vmatpush.bf16.msrb.mxu3 %v2696_v4  ;;  %v3126_v0 = vld [vmem:[#allocation11 + $0xe8] sm:$0xff] }
 0x105   :  { %1613 = vmatpush.bf16.msrb.mxu0 %v2280_v3  ;;  %1626 = vmatpush.bf16.msrb.mxu1 %v2408_v5  ;;  %v3125_v5 = vld [vmem:[#allocation11 + $0xe0] sm:$0xff] }
 0x108   :  { %1638 = vmatpush.bf16.msrb.mxu2 %v2552_v9  ;;  %1651 = vmatpush.bf16.msrb.mxu3 %v2680_v10 }
 0x109   :  { %1926 = vmatpush.bf16.msra.mxu0 %v3104_v8  ;;  %1627 = vmatmul.bf16.vlgmr.msrb.gmra.mxu1 %v3428_v24  ;;  %v3098_v24 = vld [vmem:[#allocation11 + $0x8] sm:$0xff]  ;;  %v3124_v8 = vld [vmem:[#allocation11 + $0xd8] sm:$0xff] }
 0x10a   :  { %1614 = vmatmul.bf16.vlgmr.msrb.gmra.mxu0 %v3425_v19  ;;  %1939 = vmatpush.bf16.msra.mxu1 %v3112_v21  ;;  %v3111_v19 = vld [vmem:[#allocation11 + $0x70] sm:$0xff] }
 0x10c   :  { %1639 = vmatpush.bf16.msrb.mxu2 %v2536_v16  ;;  %1652 = vmatpush.bf16.msrb.mxu3 %v2664_v17 }
 0x10d   :  { %1927 = vmatpush.bf16.msra.mxu0 %v3103_v15  ;;  %v3123_v15 = vld [vmem:[#allocation11 + $0xd0] sm:$0xff] }
 0x10e   :  { %1940 = vmatpush.bf16.msra.mxu1 %v3111_v19 }
 0x10f   :  { %1640 = vmatmul.bf16.vlgmr.msrb.gmra.mxu2 %v3432_v47  ;;  %1653 = vmatmul.bf16.vlgmr.msrb.gmra.mxu3 %v3434_v53  ;;  %v3108_v47 = vld [vmem:[#allocation11 + $0x58] sm:$0xff] }
 0x110   :  { %v3120_v53 = vld [vmem:[#allocation11 + $0xb8] sm:$0xff]  ;;  %1965 = vmatpush.bf16.msra.mxu3 %v3128_v56 }
 0x111   :  { %1928 = vmatpush.bf16.msra.mxu0 %v3102_v18  ;;  %1952 = vmatpush.bf16.msra.mxu2 %v3120_v53  ;;  %v3337_v53 = vmov 0  }
 0x112   :  { %1941 = vmatpush.bf16.msra.mxu1 %v3110_v25  ;;  %3143 = vset.pattern.permute.xlu1 %v3337_v53 }
 0x113   :  { %3144 = vset.pattern.permute.xlu0 %v3337_v53 }
 0x114   :  { %1966 = vmatpush.bf16.msra.mxu3 %v3127_v60 }
 0x115   :  { %1929 = vmatpush.bf16.msra.mxu0 %v3101_v20  ;;  %1953 = vmatpush.bf16.msra.mxu2 %v3119_v29  ;;  %v3122_v20 = vld [vmem:[#allocation11 + $0xc8] sm:$0xff] }
 0x116   :  { %1942 = vmatpush.bf16.msra.mxu1 %v3109_v27  ;;  %v3145_v27 = vld [vmem:[#allocation2] ss:$0 sm:$0xff] }
 0x118   :  { %1967 = vmatpush.bf16.msra.mxu3 %v3126_v0 }
 0x119   :  { %1930 = vmatpush.bf16.msra.mxu0 %v3100_v22  ;;  %1954 = vmatpush.bf16.msra.mxu2 %v3118_v32 }
 0x11a   :  { %1943 = vmatpush.bf16.msra.mxu1 %v3108_v47 }
 0x11c   :  { %1968 = vmatpush.bf16.msra.mxu3 %v3125_v5 }
 0x11d   :  { %1931 = vmatpush.bf16.msra.mxu0 %v3099_v23  ;;  %1955 = vmatpush.bf16.msra.mxu2 %v3117_v37 }
 0x11e   :  { %1944 = vmatpush.bf16.msra.mxu1 %v3107_v28 }
 0x120   :  { %1969 = vmatpush.bf16.msra.mxu3 %v3124_v8 }
 0x121   :  { %1932 = vmatpush.bf16.msra.mxu0 %v3098_v24  ;;  %1956 = vmatpush.bf16.msra.mxu2 %v3116_v39  ;;  %v3121_v24 = vld [vmem:[#allocation11 + $0xc0] sm:$0xff] }
 0x122   :  { %1945 = vmatpush.bf16.msra.mxu1 %v3106_v31 }
 0x124   :  { %1970 = vmatpush.bf16.msra.mxu3 %v3123_v15 }
 0x125   :  { %1933 = vmatpush.bf16.msra.mxu0 %v3097_v26  ;;  %1957 = vmatpush.bf16.msra.mxu2 %v3115_v44 }
 0x126   :  { %1946 = vmatpush.bf16.msra.mxu1 %v3105_v36 }
 0x128   :  { %1971 = vmatpush.bf16.msra.mxu3 %v3122_v20 }
 0x129   :  { %1958 = vmatpush.bf16.msra.mxu2 %v3114_v49 }
 0x12c   :  { %1972 = vmatpush.bf16.msra.mxu3 %v3121_v24 }
 0x12d   :  { %1959 = vmatpush.bf16.msra.mxu2 %v3113_v55 }
 0x144   :  { %v1459_v33 = vpop.f32.mrf.mxu0  ;;  %v1472_v34 = vpop.f32.mrf.mxu1 }
 0x145   :  { %v1460_v38 = vadd.f32 %v1459_v33, %v802_v35  ;;  %v805_v35 = vperm.slane %v3472_v30, 3  ;;  %v3146_v30 = vld [vmem:[#allocation12] ss:$0 sm:$0xff] }
 0x147   :  { %v1473_v43 = vadd.f32 %v1472_v34, %v1460_v38 }
 0x14c   :  { %v1461_v40 = vpop.f32.mrf.mxu0  ;;  %v1474_v41 = vpop.f32.mrf.mxu1 }
 0x152   :  { %v1485_v45 = vpop.f32.mrf.mxu2  ;;  %v1498_v48 = vpop.f32.mrf.mxu3 }
 0x153   :  { %v1486_v46 = vadd.f32 %v1485_v45, %v1473_v43 }
 0x154   :  { %v1511_v51 = vpop.f32.mrf.mxu0  ;;  %v1524_v52 = vpop.f32.mrf.mxu1 }
 0x155   :  { %v1499_v50 = vadd.f32 %v1498_v48, %v1486_v46  ;;  %v1512_v61 = vadd.f32 %v1511_v51, %v803_v57 }
 0x157   :  { %v1658_v54 = vmax.f32 %v1499_v50, 0.0  ;;  %v1525_v4 = vadd.f32 %v1524_v52, %v1512_v61 }
 0x159   :  { %v1662_v42 = vpack.c.bf16 %v1658_v54, %v1658_v54 }
 0x15a   :  { %v1487_v58 = vpop.f32.mrf.mxu2  ;;  %v1500_v59 = vpop.f32.mrf.mxu3 }
 0x15b   :  { %1934 = vmatmul.bf16.vlgmr.msra.gmra.mxu0 %v1662_v42 }
 0x15c   :  { %v1513_v62 = vpop.f32.mrf.mxu0  ;;  %v1526_v63 = vpop.f32.mrf.mxu1 }
 0x162   :  { %v1537_v1 = vpop.f32.mrf.mxu2  ;;  %v1550_v3 = vpop.f32.mrf.mxu3 }
 0x163   :  { %v1538_v2 = vadd.f32 %v1537_v1, %v1525_v4 }
 0x165   :  { %v1551_v6 = vadd.f32 %v1550_v3, %v1538_v2 }
 0x167   :  { %v1563_v7 = vpop.f32.mrf.mxu0  ;;  %v1659_v9 = vmax.f32 %v1551_v6, 0.0  ;;  %v1576_v10 = vpop.f32.mrf.mxu1 }
 0x168   :  { %v1564_v16 = vadd.f32 %v1563_v7, %v804_v12 }
 0x169   :  { %v1663_v11 = vpack.c.bf16 %v1659_v9, %v1659_v9 }
 0x16a   :  { %v1539_v13 = vpop.f32.mrf.mxu2  ;;  %v1552_v14 = vpop.f32.mrf.mxu3  ;;  %v1577_v21 = vadd.f32 %v1576_v10, %v1564_v16 }
 0x16b   :  { %1947 = vmatmul.bf16.vlgmr.msra.gmra.mxu1 %v1663_v11 }
 0x16d   :  { %v662_v47 = vpop.xlane.xlu0 %661 }
 0x16e   :  { %v667_v29 = vadd.f32 %v3145_v27, %v662_v47 }
 0x16f   :  { %v1565_v17 = vpop.f32.mrf.mxu0  ;;  %v1578_v18 = vpop.f32.mrf.mxu1 }
 0x170   :  { %1984 = vperm.xlu1 %3143, %v667_v29  }
 0x172   :  { %v1589_v22 = vpop.f32.mrf.mxu2  ;;  %v1602_v23 = vpop.f32.mrf.mxu3 }
 0x173   :  { %v1590_v19 = vadd.f32 %v1589_v22, %v1577_v21 }
 0x175   :  { %v1603_v25 = vadd.f32 %v1602_v23, %v1590_v19 }
 0x177   :  { %v1660_v26 = vmax.f32 %v1603_v25, 0.0 }
 0x179   :  { %v1664_v28 = vpack.c.bf16 %v1660_v26, %v1660_v26 }
 0x17a   :  { %v1591_v31 = vpop.f32.mrf.mxu2  ;;  %v1604_v32 = vpop.f32.mrf.mxu3 }
 0x17b   :  { %1960 = vmatmul.bf16.vlgmr.msra.gmra.mxu2 %v1664_v28 }
 0x186   :  { %v1628_v34 = vpop.f32.mrf.mxu1 }
 0x187   :  { %v1615_v33 = vpop.f32.mrf.mxu0 }
 0x188   :  { %v1616_v36 = vadd.f32 %v1615_v33, %v805_v35 }
 0x18a   :  { %v1629_v39 = vadd.f32 %v1628_v34, %v1616_v36 }
 0x18e   :  { %v1630_v38 = vpop.f32.mrf.mxu1 }
 0x18f   :  { %v1617_v37 = vpop.f32.mrf.mxu0 }
 0x192   :  { %v1641_v40 = vpop.f32.mrf.mxu2  ;;  %v1654_v43 = vpop.f32.mrf.mxu3 }
 0x193   :  { %v1642_v41 = vadd.f32 %v1641_v40, %v1629_v39 }
 0x195   :  { %v1655_v44 = vadd.f32 %v1654_v43, %v1642_v41 }
 0x197   :  { %v1661_v45 = vmax.f32 %v1655_v44, 0.0 }
 0x199   :  { %v1665_v46 = vpack.c.bf16 %v1661_v45, %v1661_v45 }
 0x19a   :  { %v1643_v48 = vpop.f32.mrf.mxu2  ;;  %v1656_v49 = vpop.f32.mrf.mxu3 }
 0x19b   :  { %1973 = vmatmul.bf16.vlgmr.msra.gmra.mxu3 %v1665_v46 }
 0x1d8   :  { %v1935_v50 = vpop.f32.mrf.mxu0 }
 0x1d9   :  { %v1936_v42 = vadd.f32 %v3146_v30, %v1935_v50 }
 0x1e0   :  { %v1937_v51 = vpop.f32.mrf.mxu0 }
 0x1e2   :  { %v1985_v4 = vpop.permute.xlu1 %1984 }
 0x1e8   :  { %v1948_v52 = vpop.f32.mrf.mxu1 }
 0x1e9   :  { %v1949_v57 = vadd.f32 %v1948_v52, %v1936_v42 }
 0x1f0   :  { %v1950_v54 = vpop.f32.mrf.mxu1 }
 0x1fe   :  { %v1961_v55 = vpop.f32.mrf.mxu2 }
 0x1ff   :  { %v1962_v58 = vadd.f32 %v1961_v55, %v1949_v57 }
 0x206   :  { %v1963_v56 = vpop.f32.mrf.mxu2 }
 0x21e   :  { %v1974_v59 = vpop.f32.mrf.mxu3 }
 0x21f   :  { %v1975_v60 = vadd.f32 %v1974_v59, %v1962_v58 }
 0x221   :  { %1978 = vadd.xlane.f32.xlu0 %v1975_v60 }
 0x226   :  { %v1976_v61 = vpop.f32.mrf.mxu3 }
 0x294   :  { %v1979_v62 = vpop.xlane.xlu0 %1978 }
 0x295   :  { %v1980_v63 = vmul.f32 0.125, %v1979_v62 }
 0x297   :  { %v1981_v0 = vsub.f32 %v1975_v60, %v1980_v63 }
 0x299   :  { %v1987_v1 = vadd.f32 %v1985_v4, %v1981_v0 }
 0x29b   :  { %1988 = vst [vmem:[#allocation14] sm:$0xff] %v1987_v1 }
 0x29c   :  { %1999 = dma.vmem_to_hbm [thread:$0]  %s1995_s21, 128, %s1997_s1, [#allocation5]  }
 0x29d   :  { %3323 = dma.done.wait [#allocation5], 128  }
 0x29e   :  { %3324 = vsyncadd [#allocation5], 4294967168 }
 0x29f   :  { %2004 = vsyncpa [#allocation4], 1 }
 0x2a0   :  { %2005 = vsyncpa [#allocation7], 1 }
 0x2a1   :  { %2006 = vsyncpa [#allocation10], 1 }
 0x2a2   :  { %2007 = vsyncpa [#allocation13], 1 }
 0x2a3   :  { %2008 = vsyncpa [#allocation5], 1 }

</bundles_post_ra>
